<compile_context>
chip_gen: v7x
topology: tpu7x:2x2x1
jax: 0.10.0
libtpu: 0.0.40
codegen_flags: <defaults>
</compile_context>

<pallas_src>
import functools
import math

import jax
import jax.numpy as jnp
from jax.experimental import pallas as pl
from jax.experimental.pallas import tpu as pltpu

_BN_EPS = 1e-5


def _round_up(v, m):
    return -(-v // m) * m


# --------------------------------------------------------------------------
# Fused per-image kernel (grid axis = batch)
# --------------------------------------------------------------------------
def _make_fused_kernel(H0, W0, block_config):
    n_blocks = len(block_config)

    def kernel(*refs):
        o_ref, y_ref, patch_ref = refs[-3], refs[-2], refs[-1]
        it = iter(refs[:-3])

        def conv3x3(x_val, w_ref, m_ref, W, HW):
            """im2col 3x3 conv: 9 statically-shifted taps (lane rolls + host
            precomputed border masks) written into the VMEM patch scratch,
            then a single bf16 MXU matmul against the packed weight."""
            cin = x_val.shape[0]
            for kh in range(3):
                for kw in range(3):
                    t = kh * 3 + kw
                    d = (kh - 1) * W + (kw - 1)
                    # static-shift jnp.roll (lowers to two lane slices + concat);
                    # wrap-around lanes are exactly the masked border positions.
                    s = x_val if d == 0 else jnp.roll(x_val, -d, axis=1)
                    if t != 4:                       # center tap needs no mask
                        s = s * m_ref[t:t + 1, :]
                    patch_ref[t * cin:(t + 1) * cin, :HW] = s
            patches = patch_ref[:9 * cin, :HW].astype(jnp.bfloat16)
            return jnp.dot(w_ref[...], patches,
                           preferred_element_type=jnp.float32)

        x_ref = next(it)                              # (Cin_pad, H0*W0) f32
        w0_ref = next(it)                             # (C0_pad, 9*Cin_pad) bf16
        mask_refs = [next(it) for _ in range(n_blocks)]   # (9, H*W) per resolution

        H, W = H0, W0
        HW = H * W

        # conv0 (no preceding BN/ReLU)
        c0 = w0_ref.shape[0]
        y_ref[0:c0, :HW] = conv3x3(x_ref[...], w0_ref, mask_refs[0], W, HW)
        c_cur = c0

        for bi, n_layers in enumerate(block_config):
            m_ref = mask_refs[bi]
            for _ in range(n_layers):
                w1_ref = next(it)                     # (mid, c_cur) bf16, BN1 folded
                w2_ref = next(it)                     # (gr_pad, 9*mid) bf16, BN2 folded
                assert w1_ref.shape[1] == c_cur
                # brc_1: BN -> ReLU -> (dropout id) -> 1x1 conv (BN folded in w1)
                a1 = jnp.maximum(y_ref[0:c_cur, :HW], 0.0).astype(jnp.bfloat16)
                h = jnp.dot(w1_ref[...], a1, preferred_element_type=jnp.float32)
                # brc_2: BN -> ReLU -> grouped 3x3 conv (BN folded in w2)
                h = jnp.maximum(h, 0.0)
                h = conv3x3(h, w2_ref, m_ref, W, HW)
                gr_pad = w2_ref.shape[0]
                # torch.cat([x, x_], 1): append into the preallocated channel slab
                y_ref[c_cur:c_cur + gr_pad, :HW] = h
                c_cur += gr_pad
            if bi != n_blocks - 1:
                # _Transition: AvgPool2d(2,2) as a per-image matmul
                pool_ref = next(it)                   # (H*W, Ho*Wo) bf16
                yb = y_ref[0:c_cur, :HW].astype(jnp.bfloat16)
                pooled = jnp.dot(yb, pool_ref[...],
                                 preferred_element_type=jnp.float32)
                H, W = H // 2, W // 2
                HW = H * W
                y_ref[0:c_cur, :HW] = pooled

        # norm_last (folded into fc_w) + relu_last + AvgPool2d(8) + classifier
        fcw_ref = next(it)                            # (c_cur, n_classes) f32
        fcb_ref = next(it)                            # (1, n_classes) f32
        yf = jnp.maximum(y_ref[0:c_cur, :HW], 0.0)
        feats = jnp.mean(yf, axis=1, keepdims=True)                  # (c_cur, 1)
        logits = jnp.sum(feats * fcw_ref[...], axis=0, keepdims=True) + fcb_ref[...]
        o_ref[...] = logits.reshape(1, 1, -1).astype(o_ref.dtype)    # (1,1,n_cls)

    return kernel


# --------------------------------------------------------------------------
# Forward pass (mirrors CondenseNetSConv.forward)
# --------------------------------------------------------------------------
def condensenet_sconv_forward(x_nchw, params, *, block_config, growth_rates):
    N, c_img, H0, W0 = x_nchw.shape
    n_classes = params['fc_w'].shape[1]
    n_blocks = len(block_config)
    f32, bf16 = jnp.float32, jnp.bfloat16

    cin_pad = _round_up(c_img, 8)

    # ---- image: (N,C,H,W) -> (C_pad, N*H*W) so each image is one lane slab ----
    xf = jnp.transpose(x_nchw.astype(f32), (1, 0, 2, 3)).reshape(c_img, N * H0 * W0)
    xf = jnp.pad(xf, ((0, cin_pad - c_img), (0, 0)))

    # ---- host-side weight packing / BN folding (bias=0, mean=0 per reset()) ----
    def pack3x3(w_hwio, scale_in=None, cin_to=None, cout_to=None):
        kh, kw, ci, co = w_hwio.shape
        if scale_in is not None:                  # fold BN scale over in-channels
            w_hwio = w_hwio * scale_in[None, None, :, None]
        if cin_to is not None and cin_to > ci:
            w_hwio = jnp.pad(w_hwio, ((0, 0), (0, 0), (0, cin_to - ci), (0, 0)))
        if cout_to is not None and cout_to > co:
            w_hwio = jnp.pad(w_hwio, ((0, 0), (0, 0), (0, 0), (0, cout_to - co)))
        co_p = w_hwio.shape[3]
        # (KH,KW,Cin,Cout) -> (Cout, KH*KW*Cin), (kh,kw,ci)-major
        return jnp.transpose(w_hwio, (3, 0, 1, 2)).reshape(co_p, -1).astype(bf16)

    def pack1x1(w_hwio, scale_in, real_cols, width):
        w2d = w_hwio[0, 0] * scale_in[:, None]          # (cin_real, cout), BN folded
        wt = jnp.transpose(w2d, (1, 0))                 # (cout, cin_real)
        out = jnp.zeros((wt.shape[0], width), f32)
        out = out.at[:, jnp.asarray(real_cols)].set(wt)  # scatter to padded layout
        return out.astype(bf16)

    def tap_masks(H, W):                                 # (9, H*W) combined masks
        p = jnp.arange(H * W)
        h, w = p // W, p % W
        rows = []
        for kh in range(3):
            for kw in range(3):
                dh, dw = kh - 1, kw - 1
                ok = (h + dh >= 0) & (h + dh < H) & (w + dw >= 0) & (w + dw < W)
                rows.append(ok)
        return jnp.stack(rows, axis=0).astype(f32)

    def pool2x2(H, W):                                   # per-image (H*W, Ho*Wo)
        Ho, Wo = H // 2, W // 2
        p = jnp.arange(H * W)
        tgt = (p // W // 2) * Wo + (p % W) // 2
        eq = tgt[:, None] == jnp.arange(Ho * Wo)[None, :]
        return (eq.astype(f32) * 0.25).astype(bf16)

    i_ch = 2 * growth_rates[0]
    i_ch_pad = _round_up(i_ch, 8)

    args = [xf, pack3x3(params['conv0'], cin_to=cin_pad, cout_to=i_ch_pad)]
    for bi in range(n_blocks):                           # one mask per resolution
        args.append(tap_masks(H0 // (2 ** bi), W0 // (2 ** bi)))

    real_cols = list(range(i_ch))      # padded-buffer columns holding real channels
    width = i_ch_pad                   # current padded channel count
    H, W = H0, W0
    layer_idx = 0
    for bi, n_layers in enumerate(block_config):
        gr = growth_rates[bi]
        gr_pad = _round_up(gr, 8)
        for _ in range(n_layers):
            p = params['layers'][layer_idx]
            layer_idx += 1
            args.append(pack1x1(p['w1'], p['bn1_s'], real_cols, width))
            args.append(pack3x3(p['w2'], scale_in=p['bn2_s'], cout_to=gr_pad))
            real_cols += list(range(width, width + gr))
            width += gr_pad
        if bi != n_blocks - 1:
            args.append(pool2x2(H, W))
            H, W = H // 2, W // 2
    assert H == 8 and W == 8, "pool_last (AvgPool2d(8)) expects an 8x8 final map"

    # norm_last scale folded into the classifier; padded channels get zero rows.
    fcw = params['fc_w'] * params['bn_last_s'][:, None]
    fcw_pad = jnp.zeros((width, n_classes), f32)
    fcw_pad = fcw_pad.at[jnp.asarray(real_cols), :].set(fcw)
    args.append(fcw_pad)
    args.append(params['fc_b'].reshape(1, n_classes).astype(f32))

    # ---- BlockSpecs: per-image slab for x, resident full blocks otherwise ----
    in_specs = [pl.BlockSpec((cin_pad, H0 * W0), lambda b: (0, b))]
    for a in args[1:]:
        in_specs.append(pl.BlockSpec(a.shape, lambda b, _nd=a.ndim: (0,) * _nd))

    max_cin = max([cin_pad] + [4 * g for g in growth_rates])
    patch_rows = _round_up(9 * max_cin, 8)
    c_final_pad = width
    scratch = [pltpu.VMEM((c_final_pad, H0 * W0), f32),     # dense-block feature slab
               pltpu.VMEM((patch_rows, H0 * W0), f32)]      # im2col patch matrix

    # VMEM limit derived from the actual footprint (2x for double buffering).
    arg_bytes = sum(int(a.size) * a.dtype.itemsize for a in args)
    scratch_bytes = (c_final_pad + patch_rows) * H0 * W0 * 4
    vmem_limit = min(100 << 20, max(16 << 20, 2 * arg_bytes + scratch_bytes + (4 << 20)))

    kernel = _make_fused_kernel(H0, W0, block_config)
    out3 = pl.pallas_call(
        kernel,
        grid=(N,),
        in_specs=in_specs,
        out_specs=pl.BlockSpec((1, 1, n_classes), lambda b: (b, 0, 0)),
        out_shape=jax.ShapeDtypeStruct((N, 1, n_classes), jnp.float32),
        scratch_shapes=scratch,
        compiler_params=pltpu.CompilerParams(
            dimension_semantics=("parallel",),
            vmem_limit_bytes=int(vmem_limit)),
    )(*args)
    return out3.reshape(N, n_classes)


# --------------------------------------------------------------------------
# Parameters (deterministic, following CondenseNetSConv.reset())
# --------------------------------------------------------------------------
def _conv_w(key, kh, kw, cin, cout):
    std = math.sqrt(2.0 / (kh * kw * cout))
    return std * jax.random.normal(key, (kh, kw, cin, cout), jnp.float32)


def _grouped_conv_w(key, kh, kw, cin, cout, groups):
    """Block-diagonal dense HWIO weight equivalent to a grouped conv."""
    cin_g, cout_g = cin // groups, cout // groups
    std = math.sqrt(2.0 / (kh * kw * cout))
    w = jnp.zeros((kh, kw, cin, cout), jnp.float32)
    ks = jax.random.split(key, groups)
    for g in range(groups):
        blk = std * jax.random.normal(ks[g], (kh, kw, cin_g, cout_g), jnp.float32)
        w = w.at[:, :, g * cin_g:(g + 1) * cin_g,
                 g * cout_g:(g + 1) * cout_g].set(blk)
    return w


def _bn_eval_scale_bias(c):
    # weight=1, bias=0, running_mean=0, running_var=1  ->  x / sqrt(1+eps)
    scale = jnp.full((c,), 1.0 / math.sqrt(1.0 + _BN_EPS), jnp.float32)
    bias = jnp.zeros((c,), jnp.float32)
    return scale, bias


def init_params(key, block_config, growth_rates, n_classes):
    k_iter = iter(jax.random.split(key, 128))
    params = {}
    i_channels = 2 * growth_rates[0]
    params['conv0'] = _conv_w(next(k_iter), 3, 3, 3, i_channels)

    layers = []
    n_ch = i_channels
    for bi, n_layers in enumerate(block_config):
        gr = growth_rates[bi]
        for _ in range(n_layers):
            mid = 4 * gr
            bn1_s, bn1_b = _bn_eval_scale_bias(n_ch)
            w1 = _conv_w(next(k_iter), 1, 1, n_ch, mid)
            bn2_s, bn2_b = _bn_eval_scale_bias(mid)
            w2 = _grouped_conv_w(next(k_iter), 3, 3, mid, gr, groups=4)
            layers.append(dict(bn1_s=bn1_s, bn1_b=bn1_b, w1=w1,
                               bn2_s=bn2_s, bn2_b=bn2_b, w2=w2))
            n_ch += gr
    params['layers'] = layers

    s, b = _bn_eval_scale_bias(n_ch)
    params['bn_last_s'], params['bn_last_b'] = s, b

    bound = 1.0 / math.sqrt(n_ch)
    params['fc_w'] = jax.random.uniform(next(k_iter), (n_ch, n_classes),
                                        jnp.float32, -bound, bound)
    params['fc_b'] = jnp.zeros((n_classes,), jnp.float32)   # reset(): bias = 0
    return params


# --------------------------------------------------------------------------
if __name__ == "__main__":
    block_config = (1, 1)          # 2 dense blocks, 1 layer each
    growth_rates = (4, 4)
    n_classes = 10

    key = jax.random.PRNGKey(0)
    pkey, xkey = jax.random.split(key)
    params = init_params(pkey, block_config, growth_rates, n_classes)

    # NCHW input; 16x16 so the single transition (16 -> 8) leaves an 8x8 map
    # for AvgPool2d(8).
    x = jax.random.normal(xkey, (2, 3, 16, 16), jnp.float32)

    fwd = jax.jit(functools.partial(condensenet_sconv_forward,
                                    block_config=block_config,
                                    growth_rates=growth_rates))
    out = fwd(x, params)
    jax.block_until_ready(out)
    assert out.shape == (2, n_classes)
    assert bool(jnp.all(jnp.isfinite(out)))
    print("KERNEL_OK")
</pallas_src>

<mosaic_0001>
module attributes {stable_mosaic.version = 11 : i64} {
  func.func @kernel(%arg0: i32, %arg1: memref<8x256xf32, #tpu.memory_space<vmem>>, %arg2: memref<8x72xbf16, #tpu.memory_space<vmem>>, %arg3: memref<9x256xf32, #tpu.memory_space<vmem>>, %arg4: memref<9x64xf32, #tpu.memory_space<vmem>>, %arg5: memref<16x8xbf16, #tpu.memory_space<vmem>>, %arg6: memref<8x144xbf16, #tpu.memory_space<vmem>>, %arg7: memref<256x64xbf16, #tpu.memory_space<vmem>>, %arg8: memref<16x16xbf16, #tpu.memory_space<vmem>>, %arg9: memref<8x144xbf16, #tpu.memory_space<vmem>>, %arg10: memref<24x10xf32, #tpu.memory_space<vmem>>, %arg11: memref<1x10xf32, #tpu.memory_space<vmem>>, %arg12: memref<1x1x10xf32, #tpu.memory_space<vmem>>, %arg13: memref<24x256xf32, #tpu.memory_space<vmem>>, %arg14: memref<144x256xf32, #tpu.memory_space<vmem>>) attributes {dimension_semantics = [#tpu.dimension_semantics<parallel>], iteration_bounds = array<i64: 2>, scalar_prefetch = 0 : i64, scratch_operands = 2 : i64, tpu.core_type = #tpu.core_type<tc>, window_params = [{transform_indices = @transform_0, window_bounds = array<i64: 8, 256>}, {pipeline_mode = #tpu.pipeline_mode<synchronous>, transform_indices = @transform_1, window_bounds = array<i64: 8, 72>}, {pipeline_mode = #tpu.pipeline_mode<synchronous>, transform_indices = @transform_2, window_bounds = array<i64: 9, 256>}, {pipeline_mode = #tpu.pipeline_mode<synchronous>, transform_indices = @transform_3, window_bounds = array<i64: 9, 64>}, {pipeline_mode = #tpu.pipeline_mode<synchronous>, transform_indices = @transform_4, window_bounds = array<i64: 16, 8>}, {pipeline_mode = #tpu.pipeline_mode<synchronous>, transform_indices = @transform_5, window_bounds = array<i64: 8, 144>}, {pipeline_mode = #tpu.pipeline_mode<synchronous>, transform_indices = @transform_6, window_bounds = array<i64: 256, 64>}, {pipeline_mode = #tpu.pipeline_mode<synchronous>, transform_indices = @transform_7, window_bounds = array<i64: 16, 16>}, {pipeline_mode = #tpu.pipeline_mode<synchronous>, transform_indices = @transform_8, window_bounds = array<i64: 8, 144>}, {pipeline_mode = #tpu.pipeline_mode<synchronous>, transform_indices = @transform_9, window_bounds = array<i64: 24, 10>}, {pipeline_mode = #tpu.pipeline_mode<synchronous>, transform_indices = @transform_10, window_bounds = array<i64: 1, 10>}, {transform_indices = @transform_11, window_bounds = array<i64: 1, 1, 10>}]} {
    %c0 = arith.constant 0 : index
    %c0_0 = arith.constant 0 : index
    %0 = vector.load %arg1[%c0, %c0_0] : memref<8x256xf32, #tpu.memory_space<vmem>>, vector<8x256xf32>
    %1 = vector.extract_strided_slice %0 {offsets = [0, 239], sizes = [8, 17], strides = [1, 1]} : vector<8x256xf32> to vector<8x17xf32>
    %2 = vector.extract_strided_slice %0 {offsets = [0, 0], sizes = [8, 239], strides = [1, 1]} : vector<8x256xf32> to vector<8x239xf32>
    %3 = tpu.concatenate %1, %2 in 1 : vector<8x17xf32>, vector<8x239xf32> -> vector<8x256xf32>
    %c0_1 = arith.constant 0 : index
    %c0_2 = arith.constant 0 : index
    %4 = vector.load %arg3[%c0_1, %c0_2] : memref<9x256xf32, #tpu.memory_space<vmem>>, vector<1x256xf32>
    %5 = vector.broadcast %4 : vector<1x256xf32> to vector<8x256xf32>
    %6 = arith.mulf %3, %5 : vector<8x256xf32>
    %c0_3 = arith.constant 0 : index
    %c0_4 = arith.constant 0 : index
    %7 = vector.load %arg14[%c0_3, %c0_4] : memref<144x256xf32, #tpu.memory_space<vmem>>, vector<8x256xf32>
    tpu.vector_store %arg14[%c0_3, %c0_4], %6 {strides = array<i32>} : memref<144x256xf32, #tpu.memory_space<vmem>>, vector<8x256xf32>,
    %8 = vector.extract_strided_slice %0 {offsets = [0, 240], sizes = [8, 16], strides = [1, 1]} : vector<8x256xf32> to vector<8x16xf32>
    %9 = vector.extract_strided_slice %0 {offsets = [0, 0], sizes = [8, 240], strides = [1, 1]} : vector<8x256xf32> to vector<8x240xf32>
    %10 = tpu.concatenate %8, %9 in 1 : vector<8x16xf32>, vector<8x240xf32> -> vector<8x256xf32>
    %c1 = arith.constant 1 : index
    %c0_5 = arith.constant 0 : index
    %11 = vector.load %arg3[%c1, %c0_5] : memref<9x256xf32, #tpu.memory_space<vmem>>, vector<1x256xf32>
    %12 = vector.broadcast %11 : vector<1x256xf32> to vector<8x256xf32>
    %13 = arith.mulf %10, %12 : vector<8x256xf32>
    %c8 = arith.constant 8 : index
    %c0_6 = arith.constant 0 : index
    %14 = vector.load %arg14[%c8, %c0_6] : memref<144x256xf32, #tpu.memory_space<vmem>>, vector<8x256xf32>
    tpu.vector_store %arg14[%c8, %c0_6], %13 {strides = array<i32>} : memref<144x256xf32, #tpu.memory_space<vmem>>, vector<8x256xf32>,
    %15 = vector.extract_strided_slice %0 {offsets = [0, 241], sizes = [8, 15], strides = [1, 1]} : vector<8x256xf32> to vector<8x15xf32>
    %16 = vector.extract_strided_slice %0 {offsets = [0, 0], sizes = [8, 241], strides = [1, 1]} : vector<8x256xf32> to vector<8x241xf32>
    %17 = tpu.concatenate %15, %16 in 1 : vector<8x15xf32>, vector<8x241xf32> -> vector<8x256xf32>
    %c2 = arith.constant 2 : index
    %c0_7 = arith.constant 0 : index
    %18 = vector.load %arg3[%c2, %c0_7] : memref<9x256xf32, #tpu.memory_space<vmem>>, vector<1x256xf32>
    %19 = vector.broadcast %18 : vector<1x256xf32> to vector<8x256xf32>
    %20 = arith.mulf %17, %19 : vector<8x256xf32>
    %c16 = arith.constant 16 : index
    %c0_8 = arith.constant 0 : index
    %21 = vector.load %arg14[%c16, %c0_8] : memref<144x256xf32, #tpu.memory_space<vmem>>, vector<8x256xf32>
    tpu.vector_store %arg14[%c16, %c0_8], %20 {strides = array<i32>} : memref<144x256xf32, #tpu.memory_space<vmem>>, vector<8x256xf32>,
    %22 = vector.extract_strided_slice %0 {offsets = [0, 255], sizes = [8, 1], strides = [1, 1]} : vector<8x256xf32> to vector<8x1xf32>
    %23 = vector.extract_strided_slice %0 {offsets = [0, 0], sizes = [8, 255], strides = [1, 1]} : vector<8x256xf32> to vector<8x255xf32>
    %24 = tpu.concatenate %22, %23 in 1 : vector<8x1xf32>, vector<8x255xf32> -> vector<8x256xf32>
    %c3 = arith.constant 3 : index
    %c0_9 = arith.constant 0 : index
    %25 = vector.load %arg3[%c3, %c0_9] : memref<9x256xf32, #tpu.memory_space<vmem>>, vector<1x256xf32>
    %26 = vector.broadcast %25 : vector<1x256xf32> to vector<8x256xf32>
    %27 = arith.mulf %24, %26 : vector<8x256xf32>
    %c24 = arith.constant 24 : index
    %c0_10 = arith.constant 0 : index
    %28 = vector.load %arg14[%c24, %c0_10] : memref<144x256xf32, #tpu.memory_space<vmem>>, vector<8x256xf32>
    tpu.vector_store %arg14[%c24, %c0_10], %27 {strides = array<i32>} : memref<144x256xf32, #tpu.memory_space<vmem>>, vector<8x256xf32>,
    %c32 = arith.constant 32 : index
    %c0_11 = arith.constant 0 : index
    %29 = vector.load %arg14[%c32, %c0_11] : memref<144x256xf32, #tpu.memory_space<vmem>>, vector<8x256xf32>
    tpu.vector_store %arg14[%c32, %c0_11], %0 {strides = array<i32>} : memref<144x256xf32, #tpu.memory_space<vmem>>, vector<8x256xf32>,
    %30 = vector.extract_strided_slice %0 {offsets = [0, 1], sizes = [8, 255], strides = [1, 1]} : vector<8x256xf32> to vector<8x255xf32>
    %31 = vector.extract_strided_slice %0 {offsets = [0, 0], sizes = [8, 1], strides = [1, 1]} : vector<8x256xf32> to vector<8x1xf32>
    %32 = tpu.concatenate %30, %31 in 1 : vector<8x255xf32>, vector<8x1xf32> -> vector<8x256xf32>
    %c5 = arith.constant 5 : index
    %c0_12 = arith.constant 0 : index
    %33 = vector.load %arg3[%c5, %c0_12] : memref<9x256xf32, #tpu.memory_space<vmem>>, vector<1x256xf32>
    %34 = vector.broadcast %33 : vector<1x256xf32> to vector<8x256xf32>
    %35 = arith.mulf %32, %34 : vector<8x256xf32>
    %c40 = arith.constant 40 : index
    %c0_13 = arith.constant 0 : index
    %36 = vector.load %arg14[%c40, %c0_13] : memref<144x256xf32, #tpu.memory_space<vmem>>, vector<8x256xf32>
    tpu.vector_store %arg14[%c40, %c0_13], %35 {strides = array<i32>} : memref<144x256xf32, #tpu.memory_space<vmem>>, vector<8x256xf32>,
    %37 = vector.extract_strided_slice %0 {offsets = [0, 15], sizes = [8, 241], strides = [1, 1]} : vector<8x256xf32> to vector<8x241xf32>
    %38 = vector.extract_strided_slice %0 {offsets = [0, 0], sizes = [8, 15], strides = [1, 1]} : vector<8x256xf32> to vector<8x15xf32>
    %39 = tpu.concatenate %37, %38 in 1 : vector<8x241xf32>, vector<8x15xf32> -> vector<8x256xf32>
    %c6 = arith.constant 6 : index
    %c0_14 = arith.constant 0 : index
    %40 = vector.load %arg3[%c6, %c0_14] : memref<9x256xf32, #tpu.memory_space<vmem>>, vector<1x256xf32>
    %41 = vector.broadcast %40 : vector<1x256xf32> to vector<8x256xf32>
    %42 = arith.mulf %39, %41 : vector<8x256xf32>
    %c48 = arith.constant 48 : index
    %c0_15 = arith.constant 0 : index
    %43 = vector.load %arg14[%c48, %c0_15] : memref<144x256xf32, #tpu.memory_space<vmem>>, vector<8x256xf32>
    tpu.vector_store %arg14[%c48, %c0_15], %42 {strides = array<i32>} : memref<144x256xf32, #tpu.memory_space<vmem>>, vector<8x256xf32>,
    %44 = vector.extract_strided_slice %0 {offsets = [0, 16], sizes = [8, 240], strides = [1, 1]} : vector<8x256xf32> to vector<8x240xf32>
    %45 = vector.extract_strided_slice %0 {offsets = [0, 0], sizes = [8, 16], strides = [1, 1]} : vector<8x256xf32> to vector<8x16xf32>
    %46 = tpu.concatenate %44, %45 in 1 : vector<8x240xf32>, vector<8x16xf32> -> vector<8x256xf32>
    %c7 = arith.constant 7 : index
    %c0_16 = arith.constant 0 : index
    %47 = vector.load %arg3[%c7, %c0_16] : memref<9x256xf32, #tpu.memory_space<vmem>>, vector<1x256xf32>
    %48 = vector.broadcast %47 : vector<1x256xf32> to vector<8x256xf32>
    %49 = arith.mulf %46, %48 : vector<8x256xf32>
    %c56 = arith.constant 56 : index
    %c0_17 = arith.constant 0 : index
    %50 = vector.load %arg14[%c56, %c0_17] : memref<144x256xf32, #tpu.memory_space<vmem>>, vector<8x256xf32>
    tpu.vector_store %arg14[%c56, %c0_17], %49 {strides = array<i32>} : memref<144x256xf32, #tpu.memory_space<vmem>>, vector<8x256xf32>,
    %51 = vector.extract_strided_slice %0 {offsets = [0, 17], sizes = [8, 239], strides = [1, 1]} : vector<8x256xf32> to vector<8x239xf32>
    %52 = vector.extract_strided_slice %0 {offsets = [0, 0], sizes = [8, 17], strides = [1, 1]} : vector<8x256xf32> to vector<8x17xf32>
    %53 = tpu.concatenate %51, %52 in 1 : vector<8x239xf32>, vector<8x17xf32> -> vector<8x256xf32>
    %c8_18 = arith.constant 8 : index
    %c0_19 = arith.constant 0 : index
    %54 = vector.load %arg3[%c8_18, %c0_19] : memref<9x256xf32, #tpu.memory_space<vmem>>, vector<1x256xf32>
    %55 = vector.broadcast %54 : vector<1x256xf32> to vector<8x256xf32>
    %56 = arith.mulf %53, %55 : vector<8x256xf32>
    %c64 = arith.constant 64 : index
    %c0_20 = arith.constant 0 : index
    %57 = vector.load %arg14[%c64, %c0_20] : memref<144x256xf32, #tpu.memory_space<vmem>>, vector<8x256xf32>
    tpu.vector_store %arg14[%c64, %c0_20], %56 {strides = array<i32>} : memref<144x256xf32, #tpu.memory_space<vmem>>, vector<8x256xf32>,
    %c0_21 = arith.constant 0 : index
    %c0_22 = arith.constant 0 : index
    %58 = vector.load %arg14[%c0_21, %c0_22] : memref<144x256xf32, #tpu.memory_space<vmem>>, vector<72x256xf32>
    %59 = arith.truncf %58 : vector<72x256xf32> to vector<72x256xbf16>
    %c0_23 = arith.constant 0 : index
    %c0_24 = arith.constant 0 : index
    %60 = vector.load %arg2[%c0_23, %c0_24] : memref<8x72xbf16, #tpu.memory_space<vmem>>, vector<8x72xbf16>
    %cst = arith.constant dense<0.000000e+00> : vector<8x256xf32>
    %61 = tpu.matmul %60, %59, %cst {dimension_numbers = #tpu.dot_dimension_numbers<[1], [0], [0], [1], [0, 0, 1, 1], [], []>} : vector<8x72xbf16>, vector<72x256xbf16>, vector<8x256xf32> -> vector<8x256xf32>
    %c0_25 = arith.constant 0 : index
    %c0_26 = arith.constant 0 : index
    %62 = vector.load %arg13[%c0_25, %c0_26] : memref<24x256xf32, #tpu.memory_space<vmem>>, vector<8x256xf32>
    tpu.vector_store %arg13[%c0_25, %c0_26], %61 {strides = array<i32>} : memref<24x256xf32, #tpu.memory_space<vmem>>, vector<8x256xf32>,
    %c0_27 = arith.constant 0 : index
    %c0_28 = arith.constant 0 : index
    %63 = vector.load %arg13[%c0_27, %c0_28] : memref<24x256xf32, #tpu.memory_space<vmem>>, vector<8x256xf32>
    %cst_29 = arith.constant 0.000000e+00 : f32
    %64 = vector.broadcast %cst_29 : f32 to vector<8x256xf32>
    %65 = arith.maximumf %63, %64 : vector<8x256xf32>
    %66 = arith.truncf %65 : vector<8x256xf32> to vector<8x256xbf16>
    %c0_30 = arith.constant 0 : index
    %c0_31 = arith.constant 0 : index
    %67 = vector.load %arg5[%c0_30, %c0_31] : memref<16x8xbf16, #tpu.memory_space<vmem>>, vector<16x8xbf16>
    %cst_32 = arith.constant dense<0.000000e+00> : vector<16x256xf32>
    %68 = tpu.matmul %67, %66, %cst_32 {dimension_numbers = #tpu.dot_dimension_numbers<[1], [0], [0], [1], [0, 0, 1, 1], [], []>} : vector<16x8xbf16>, vector<8x256xbf16>, vector<16x256xf32> -> vector<16x256xf32>
    %cst_33 = arith.constant 0.000000e+00 : f32
    %69 = vector.broadcast %cst_33 : f32 to vector<16x256xf32>
    %70 = arith.maximumf %68, %69 : vector<16x256xf32>
    %71 = vector.extract_strided_slice %70 {offsets = [0, 239], sizes = [16, 17], strides = [1, 1]} : vector<16x256xf32> to vector<16x17xf32>
    %72 = vector.extract_strided_slice %70 {offsets = [0, 0], sizes = [16, 239], strides = [1, 1]} : vector<16x256xf32> to vector<16x239xf32>
    %73 = tpu.concatenate %71, %72 in 1 : vector<16x17xf32>, vector<16x239xf32> -> vector<16x256xf32>
    %c0_34 = arith.constant 0 : index
    %c0_35 = arith.constant 0 : index
    %74 = vector.load %arg3[%c0_34, %c0_35] : memref<9x256xf32, #tpu.memory_space<vmem>>, vector<1x256xf32>
    %75 = vector.broadcast %74 : vector<1x256xf32> to vector<16x256xf32>
    %76 = arith.mulf %73, %75 : vector<16x256xf32>
    %c0_36 = arith.constant 0 : index
    %c0_37 = arith.constant 0 : index
    %77 = vector.load %arg14[%c0_36, %c0_37] : memref<144x256xf32, #tpu.memory_space<vmem>>, vector<16x256xf32>
    tpu.vector_store %arg14[%c0_36, %c0_37], %76 {strides = array<i32>} : memref<144x256xf32, #tpu.memory_space<vmem>>, vector<16x256xf32>,
    %78 = vector.extract_strided_slice %70 {offsets = [0, 240], sizes = [16, 16], strides = [1, 1]} : vector<16x256xf32> to vector<16x16xf32>
    %79 = vector.extract_strided_slice %70 {offsets = [0, 0], sizes = [16, 240], strides = [1, 1]} : vector<16x256xf32> to vector<16x240xf32>
    %80 = tpu.concatenate %78, %79 in 1 : vector<16x16xf32>, vector<16x240xf32> -> vector<16x256xf32>
    %c1_38 = arith.constant 1 : index
    %c0_39 = arith.constant 0 : index
    %81 = vector.load %arg3[%c1_38, %c0_39] : memref<9x256xf32, #tpu.memory_space<vmem>>, vector<1x256xf32>
    %82 = vector.broadcast %81 : vector<1x256xf32> to vector<16x256xf32>
    %83 = arith.mulf %80, %82 : vector<16x256xf32>
    %c16_40 = arith.constant 16 : index
    %c0_41 = arith.constant 0 : index
    %84 = vector.load %arg14[%c16_40, %c0_41] : memref<144x256xf32, #tpu.memory_space<vmem>>, vector<16x256xf32>
    tpu.vector_store %arg14[%c16_40, %c0_41], %83 {strides = array<i32>} : memref<144x256xf32, #tpu.memory_space<vmem>>, vector<16x256xf32>,
    %85 = vector.extract_strided_slice %70 {offsets = [0, 241], sizes = [16, 15], strides = [1, 1]} : vector<16x256xf32> to vector<16x15xf32>
    %86 = vector.extract_strided_slice %70 {offsets = [0, 0], sizes = [16, 241], strides = [1, 1]} : vector<16x256xf32> to vector<16x241xf32>
    %87 = tpu.concatenate %85, %86 in 1 : vector<16x15xf32>, vector<16x241xf32> -> vector<16x256xf32>
    %c2_42 = arith.constant 2 : index
    %c0_43 = arith.constant 0 : index
    %88 = vector.load %arg3[%c2_42, %c0_43] : memref<9x256xf32, #tpu.memory_space<vmem>>, vector<1x256xf32>
    %89 = vector.broadcast %88 : vector<1x256xf32> to vector<16x256xf32>
    %90 = arith.mulf %87, %89 : vector<16x256xf32>
    %c32_44 = arith.constant 32 : index
    %c0_45 = arith.constant 0 : index
    %91 = vector.load %arg14[%c32_44, %c0_45] : memref<144x256xf32, #tpu.memory_space<vmem>>, vector<16x256xf32>
    tpu.vector_store %arg14[%c32_44, %c0_45], %90 {strides = array<i32>} : memref<144x256xf32, #tpu.memory_space<vmem>>, vector<16x256xf32>,
    %92 = vector.extract_strided_slice %70 {offsets = [0, 255], sizes = [16, 1], strides = [1, 1]} : vector<16x256xf32> to vector<16x1xf32>
    %93 = vector.extract_strided_slice %70 {offsets = [0, 0], sizes = [16, 255], strides = [1, 1]} : vector<16x256xf32> to vector<16x255xf32>
    %94 = tpu.concatenate %92, %93 in 1 : vector<16x1xf32>, vector<16x255xf32> -> vector<16x256xf32>
    %c3_46 = arith.constant 3 : index
    %c0_47 = arith.constant 0 : index
    %95 = vector.load %arg3[%c3_46, %c0_47] : memref<9x256xf32, #tpu.memory_space<vmem>>, vector<1x256xf32>
    %96 = vector.broadcast %95 : vector<1x256xf32> to vector<16x256xf32>
    %97 = arith.mulf %94, %96 : vector<16x256xf32>
    %c48_48 = arith.constant 48 : index
    %c0_49 = arith.constant 0 : index
    %98 = vector.load %arg14[%c48_48, %c0_49] : memref<144x256xf32, #tpu.memory_space<vmem>>, vector<16x256xf32>
    tpu.vector_store %arg14[%c48_48, %c0_49], %97 {strides = array<i32>} : memref<144x256xf32, #tpu.memory_space<vmem>>, vector<16x256xf32>,
    %c64_50 = arith.constant 64 : index
    %c0_51 = arith.constant 0 : index
    %99 = vector.load %arg14[%c64_50, %c0_51] : memref<144x256xf32, #tpu.memory_space<vmem>>, vector<16x256xf32>
    tpu.vector_store %arg14[%c64_50, %c0_51], %70 {strides = array<i32>} : memref<144x256xf32, #tpu.memory_space<vmem>>, vector<16x256xf32>,
    %100 = vector.extract_strided_slice %70 {offsets = [0, 1], sizes = [16, 255], strides = [1, 1]} : vector<16x256xf32> to vector<16x255xf32>
    %101 = vector.extract_strided_slice %70 {offsets = [0, 0], sizes = [16, 1], strides = [1, 1]} : vector<16x256xf32> to vector<16x1xf32>
    %102 = tpu.concatenate %100, %101 in 1 : vector<16x255xf32>, vector<16x1xf32> -> vector<16x256xf32>
    %c5_52 = arith.constant 5 : index
    %c0_53 = arith.constant 0 : index
    %103 = vector.load %arg3[%c5_52, %c0_53] : memref<9x256xf32, #tpu.memory_space<vmem>>, vector<1x256xf32>
    %104 = vector.broadcast %103 : vector<1x256xf32> to vector<16x256xf32>
    %105 = arith.mulf %102, %104 : vector<16x256xf32>
    %c80 = arith.constant 80 : index
    %c0_54 = arith.constant 0 : index
    %106 = vector.load %arg14[%c80, %c0_54] : memref<144x256xf32, #tpu.memory_space<vmem>>, vector<16x256xf32>
    tpu.vector_store %arg14[%c80, %c0_54], %105 {strides = array<i32>} : memref<144x256xf32, #tpu.memory_space<vmem>>, vector<16x256xf32>,
    %107 = vector.extract_strided_slice %70 {offsets = [0, 15], sizes = [16, 241], strides = [1, 1]} : vector<16x256xf32> to vector<16x241xf32>
    %108 = vector.extract_strided_slice %70 {offsets = [0, 0], sizes = [16, 15], strides = [1, 1]} : vector<16x256xf32> to vector<16x15xf32>
    %109 = tpu.concatenate %107, %108 in 1 : vector<16x241xf32>, vector<16x15xf32> -> vector<16x256xf32>
    %c6_55 = arith.constant 6 : index
    %c0_56 = arith.constant 0 : index
    %110 = vector.load %arg3[%c6_55, %c0_56] : memref<9x256xf32, #tpu.memory_space<vmem>>, vector<1x256xf32>
    %111 = vector.broadcast %110 : vector<1x256xf32> to vector<16x256xf32>
    %112 = arith.mulf %109, %111 : vector<16x256xf32>
    %c96 = arith.constant 96 : index
    %c0_57 = arith.constant 0 : index
    %113 = vector.load %arg14[%c96, %c0_57] : memref<144x256xf32, #tpu.memory_space<vmem>>, vector<16x256xf32>
    tpu.vector_store %arg14[%c96, %c0_57], %112 {strides = array<i32>} : memref<144x256xf32, #tpu.memory_space<vmem>>, vector<16x256xf32>,
    %114 = vector.extract_strided_slice %70 {offsets = [0, 16], sizes = [16, 240], strides = [1, 1]} : vector<16x256xf32> to vector<16x240xf32>
    %115 = vector.extract_strided_slice %70 {offsets = [0, 0], sizes = [16, 16], strides = [1, 1]} : vector<16x256xf32> to vector<16x16xf32>
    %116 = tpu.concatenate %114, %115 in 1 : vector<16x240xf32>, vector<16x16xf32> -> vector<16x256xf32>
    %c7_58 = arith.constant 7 : index
    %c0_59 = arith.constant 0 : index
    %117 = vector.load %arg3[%c7_58, %c0_59] : memref<9x256xf32, #tpu.memory_space<vmem>>, vector<1x256xf32>
    %118 = vector.broadcast %117 : vector<1x256xf32> to vector<16x256xf32>
    %119 = arith.mulf %116, %118 : vector<16x256xf32>
    %c112 = arith.constant 112 : index
    %c0_60 = arith.constant 0 : index
    %120 = vector.load %arg14[%c112, %c0_60] : memref<144x256xf32, #tpu.memory_space<vmem>>, vector<16x256xf32>
    tpu.vector_store %arg14[%c112, %c0_60], %119 {strides = array<i32>} : memref<144x256xf32, #tpu.memory_space<vmem>>, vector<16x256xf32>,
    %121 = vector.extract_strided_slice %70 {offsets = [0, 17], sizes = [16, 239], strides = [1, 1]} : vector<16x256xf32> to vector<16x239xf32>
    %122 = vector.extract_strided_slice %70 {offsets = [0, 0], sizes = [16, 17], strides = [1, 1]} : vector<16x256xf32> to vector<16x17xf32>
    %123 = tpu.concatenate %121, %122 in 1 : vector<16x239xf32>, vector<16x17xf32> -> vector<16x256xf32>
    %c8_61 = arith.constant 8 : index
    %c0_62 = arith.constant 0 : index
    %124 = vector.load %arg3[%c8_61, %c0_62] : memref<9x256xf32, #tpu.memory_space<vmem>>, vector<1x256xf32>
    %125 = vector.broadcast %124 : vector<1x256xf32> to vector<16x256xf32>
    %126 = arith.mulf %123, %125 : vector<16x256xf32>
    %c128 = arith.constant 128 : index
    %c0_63 = arith.constant 0 : index
    %127 = vector.load %arg14[%c128, %c0_63] : memref<144x256xf32, #tpu.memory_space<vmem>>, vector<16x256xf32>
    tpu.vector_store %arg14[%c128, %c0_63], %126 {strides = array<i32>} : memref<144x256xf32, #tpu.memory_space<vmem>>, vector<16x256xf32>,
    %c0_64 = arith.constant 0 : index
    %c0_65 = arith.constant 0 : index
    %128 = vector.load %arg14[%c0_64, %c0_65] : memref<144x256xf32, #tpu.memory_space<vmem>>, vector<144x256xf32>
    %129 = arith.truncf %128 : vector<144x256xf32> to vector<144x256xbf16>
    %c0_66 = arith.constant 0 : index
    %c0_67 = arith.constant 0 : index
    %130 = vector.load %arg6[%c0_66, %c0_67] : memref<8x144xbf16, #tpu.memory_space<vmem>>, vector<8x144xbf16>
    %cst_68 = arith.constant dense<0.000000e+00> : vector<8x256xf32>
    %131 = tpu.matmul %130, %129, %cst_68 {dimension_numbers = #tpu.dot_dimension_numbers<[1], [0], [0], [1], [0, 0, 1, 1], [], []>} : vector<8x144xbf16>, vector<144x256xbf16>, vector<8x256xf32> -> vector<8x256xf32>
    %c8_69 = arith.constant 8 : index
    %c0_70 = arith.constant 0 : index
    %132 = vector.load %arg13[%c8_69, %c0_70] : memref<24x256xf32, #tpu.memory_space<vmem>>, vector<8x256xf32>
    tpu.vector_store %arg13[%c8_69, %c0_70], %131 {strides = array<i32>} : memref<24x256xf32, #tpu.memory_space<vmem>>, vector<8x256xf32>,
    %c0_71 = arith.constant 0 : index
    %c0_72 = arith.constant 0 : index
    %133 = vector.load %arg13[%c0_71, %c0_72] : memref<24x256xf32, #tpu.memory_space<vmem>>, vector<16x256xf32>
    %134 = arith.truncf %133 : vector<16x256xf32> to vector<16x256xbf16>
    %c0_73 = arith.constant 0 : index
    %c0_74 = arith.constant 0 : index
    %135 = vector.load %arg7[%c0_73, %c0_74] : memref<256x64xbf16, #tpu.memory_space<vmem>>, vector<256x64xbf16>
    %cst_75 = arith.constant dense<0.000000e+00> : vector<16x64xf32>
    %136 = tpu.matmul %134, %135, %cst_75 {dimension_numbers = #tpu.dot_dimension_numbers<[1], [0], [0], [1], [0, 0, 1, 1], [], []>} : vector<16x256xbf16>, vector<256x64xbf16>, vector<16x64xf32> -> vector<16x64xf32>
    %c0_76 = arith.constant 0 : index
    %c0_77 = arith.constant 0 : index
    %137 = vector.load %arg13[%c0_76, %c0_77] : memref<24x256xf32, #tpu.memory_space<vmem>>, vector<16x64xf32>
    tpu.vector_store %arg13[%c0_76, %c0_77], %136 {strides = array<i32>} : memref<24x256xf32, #tpu.memory_space<vmem>>, vector<16x64xf32>,
    %c0_78 = arith.constant 0 : index
    %c0_79 = arith.constant 0 : index
    %138 = vector.load %arg13[%c0_78, %c0_79] : memref<24x256xf32, #tpu.memory_space<vmem>>, vector<16x64xf32>
    %cst_80 = arith.constant 0.000000e+00 : f32
    %139 = vector.broadcast %cst_80 : f32 to vector<16x64xf32>
    %140 = arith.maximumf %138, %139 : vector<16x64xf32>
    %141 = arith.truncf %140 : vector<16x64xf32> to vector<16x64xbf16>
    %c0_81 = arith.constant 0 : index
    %c0_82 = arith.constant 0 : index
    %142 = vector.load %arg8[%c0_81, %c0_82] : memref<16x16xbf16, #tpu.memory_space<vmem>>, vector<16x16xbf16>
    %cst_83 = arith.constant dense<0.000000e+00> : vector<16x64xf32>
    %143 = tpu.matmul %142, %141, %cst_83 {dimension_numbers = #tpu.dot_dimension_numbers<[1], [0], [0], [1], [0, 0, 1, 1], [], []>} : vector<16x16xbf16>, vector<16x64xbf16>, vector<16x64xf32> -> vector<16x64xf32>
    %cst_84 = arith.constant 0.000000e+00 : f32
    %144 = vector.broadcast %cst_84 : f32 to vector<16x64xf32>
    %145 = arith.maximumf %143, %144 : vector<16x64xf32>
    %146 = vector.extract_strided_slice %145 {offsets = [0, 55], sizes = [16, 9], strides = [1, 1]} : vector<16x64xf32> to vector<16x9xf32>
    %147 = vector.extract_strided_slice %145 {offsets = [0, 0], sizes = [16, 55], strides = [1, 1]} : vector<16x64xf32> to vector<16x55xf32>
    %148 = tpu.concatenate %146, %147 in 1 : vector<16x9xf32>, vector<16x55xf32> -> vector<16x64xf32>
    %c0_85 = arith.constant 0 : index
    %c0_86 = arith.constant 0 : index
    %149 = vector.load %arg4[%c0_85, %c0_86] : memref<9x64xf32, #tpu.memory_space<vmem>>, vector<1x64xf32>
    %150 = vector.broadcast %149 : vector<1x64xf32> to vector<16x64xf32>
    %151 = arith.mulf %148, %150 : vector<16x64xf32>
    %c0_87 = arith.constant 0 : index
    %c0_88 = arith.constant 0 : index
    %152 = vector.load %arg14[%c0_87, %c0_88] : memref<144x256xf32, #tpu.memory_space<vmem>>, vector<16x64xf32>
    tpu.vector_store %arg14[%c0_87, %c0_88], %151 {strides = array<i32>} : memref<144x256xf32, #tpu.memory_space<vmem>>, vector<16x64xf32>,
    %153 = vector.extract_strided_slice %145 {offsets = [0, 56], sizes = [16, 8], strides = [1, 1]} : vector<16x64xf32> to vector<16x8xf32>
    %154 = vector.extract_strided_slice %145 {offsets = [0, 0], sizes = [16, 56], strides = [1, 1]} : vector<16x64xf32> to vector<16x56xf32>
    %155 = tpu.concatenate %153, %154 in 1 : vector<16x8xf32>, vector<16x56xf32> -> vector<16x64xf32>
    %c1_89 = arith.constant 1 : index
    %c0_90 = arith.constant 0 : index
    %156 = vector.load %arg4[%c1_89, %c0_90] : memref<9x64xf32, #tpu.memory_space<vmem>>, vector<1x64xf32>
    %157 = vector.broadcast %156 : vector<1x64xf32> to vector<16x64xf32>
    %158 = arith.mulf %155, %157 : vector<16x64xf32>
    %c16_91 = arith.constant 16 : index
    %c0_92 = arith.constant 0 : index
    %159 = vector.load %arg14[%c16_91, %c0_92] : memref<144x256xf32, #tpu.memory_space<vmem>>, vector<16x64xf32>
    tpu.vector_store %arg14[%c16_91, %c0_92], %158 {strides = array<i32>} : memref<144x256xf32, #tpu.memory_space<vmem>>, vector<16x64xf32>,
    %160 = vector.extract_strided_slice %145 {offsets = [0, 57], sizes = [16, 7], strides = [1, 1]} : vector<16x64xf32> to vector<16x7xf32>
    %161 = vector.extract_strided_slice %145 {offsets = [0, 0], sizes = [16, 57], strides = [1, 1]} : vector<16x64xf32> to vector<16x57xf32>
    %162 = tpu.concatenate %160, %161 in 1 : vector<16x7xf32>, vector<16x57xf32> -> vector<16x64xf32>
    %c2_93 = arith.constant 2 : index
    %c0_94 = arith.constant 0 : index
    %163 = vector.load %arg4[%c2_93, %c0_94] : memref<9x64xf32, #tpu.memory_space<vmem>>, vector<1x64xf32>
    %164 = vector.broadcast %163 : vector<1x64xf32> to vector<16x64xf32>
    %165 = arith.mulf %162, %164 : vector<16x64xf32>
    %c32_95 = arith.constant 32 : index
    %c0_96 = arith.constant 0 : index
    %166 = vector.load %arg14[%c32_95, %c0_96] : memref<144x256xf32, #tpu.memory_space<vmem>>, vector<16x64xf32>
    tpu.vector_store %arg14[%c32_95, %c0_96], %165 {strides = array<i32>} : memref<144x256xf32, #tpu.memory_space<vmem>>, vector<16x64xf32>,
    %167 = vector.extract_strided_slice %145 {offsets = [0, 63], sizes = [16, 1], strides = [1, 1]} : vector<16x64xf32> to vector<16x1xf32>
    %168 = vector.extract_strided_slice %145 {offsets = [0, 0], sizes = [16, 63], strides = [1, 1]} : vector<16x64xf32> to vector<16x63xf32>
    %169 = tpu.concatenate %167, %168 in 1 : vector<16x1xf32>, vector<16x63xf32> -> vector<16x64xf32>
    %c3_97 = arith.constant 3 : index
    %c0_98 = arith.constant 0 : index
    %170 = vector.load %arg4[%c3_97, %c0_98] : memref<9x64xf32, #tpu.memory_space<vmem>>, vector<1x64xf32>
    %171 = vector.broadcast %170 : vector<1x64xf32> to vector<16x64xf32>
    %172 = arith.mulf %169, %171 : vector<16x64xf32>
    %c48_99 = arith.constant 48 : index
    %c0_100 = arith.constant 0 : index
    %173 = vector.load %arg14[%c48_99, %c0_100] : memref<144x256xf32, #tpu.memory_space<vmem>>, vector<16x64xf32>
    tpu.vector_store %arg14[%c48_99, %c0_100], %172 {strides = array<i32>} : memref<144x256xf32, #tpu.memory_space<vmem>>, vector<16x64xf32>,
    %c64_101 = arith.constant 64 : index
    %c0_102 = arith.constant 0 : index
    %174 = vector.load %arg14[%c64_101, %c0_102] : memref<144x256xf32, #tpu.memory_space<vmem>>, vector<16x64xf32>
    tpu.vector_store %arg14[%c64_101, %c0_102], %145 {strides = array<i32>} : memref<144x256xf32, #tpu.memory_space<vmem>>, vector<16x64xf32>,
    %175 = vector.extract_strided_slice %145 {offsets = [0, 1], sizes = [16, 63], strides = [1, 1]} : vector<16x64xf32> to vector<16x63xf32>
    %176 = vector.extract_strided_slice %145 {offsets = [0, 0], sizes = [16, 1], strides = [1, 1]} : vector<16x64xf32> to vector<16x1xf32>
    %177 = tpu.concatenate %175, %176 in 1 : vector<16x63xf32>, vector<16x1xf32> -> vector<16x64xf32>
    %c5_103 = arith.constant 5 : index
    %c0_104 = arith.constant 0 : index
    %178 = vector.load %arg4[%c5_103, %c0_104] : memref<9x64xf32, #tpu.memory_space<vmem>>, vector<1x64xf32>
    %179 = vector.broadcast %178 : vector<1x64xf32> to vector<16x64xf32>
    %180 = arith.mulf %177, %179 : vector<16x64xf32>
    %c80_105 = arith.constant 80 : index
    %c0_106 = arith.constant 0 : index
    %181 = vector.load %arg14[%c80_105, %c0_106] : memref<144x256xf32, #tpu.memory_space<vmem>>, vector<16x64xf32>
    tpu.vector_store %arg14[%c80_105, %c0_106], %180 {strides = array<i32>} : memref<144x256xf32, #tpu.memory_space<vmem>>, vector<16x64xf32>,
    %182 = vector.extract_strided_slice %145 {offsets = [0, 7], sizes = [16, 57], strides = [1, 1]} : vector<16x64xf32> to vector<16x57xf32>
    %183 = vector.extract_strided_slice %145 {offsets = [0, 0], sizes = [16, 7], strides = [1, 1]} : vector<16x64xf32> to vector<16x7xf32>
    %184 = tpu.concatenate %182, %183 in 1 : vector<16x57xf32>, vector<16x7xf32> -> vector<16x64xf32>
    %c6_107 = arith.constant 6 : index
    %c0_108 = arith.constant 0 : index
    %185 = vector.load %arg4[%c6_107, %c0_108] : memref<9x64xf32, #tpu.memory_space<vmem>>, vector<1x64xf32>
    %186 = vector.broadcast %185 : vector<1x64xf32> to vector<16x64xf32>
    %187 = arith.mulf %184, %186 : vector<16x64xf32>
    %c96_109 = arith.constant 96 : index
    %c0_110 = arith.constant 0 : index
    %188 = vector.load %arg14[%c96_109, %c0_110] : memref<144x256xf32, #tpu.memory_space<vmem>>, vector<16x64xf32>
    tpu.vector_store %arg14[%c96_109, %c0_110], %187 {strides = array<i32>} : memref<144x256xf32, #tpu.memory_space<vmem>>, vector<16x64xf32>,
    %189 = vector.extract_strided_slice %145 {offsets = [0, 8], sizes = [16, 56], strides = [1, 1]} : vector<16x64xf32> to vector<16x56xf32>
    %190 = vector.extract_strided_slice %145 {offsets = [0, 0], sizes = [16, 8], strides = [1, 1]} : vector<16x64xf32> to vector<16x8xf32>
    %191 = tpu.concatenate %189, %190 in 1 : vector<16x56xf32>, vector<16x8xf32> -> vector<16x64xf32>
    %c7_111 = arith.constant 7 : index
    %c0_112 = arith.constant 0 : index
    %192 = vector.load %arg4[%c7_111, %c0_112] : memref<9x64xf32, #tpu.memory_space<vmem>>, vector<1x64xf32>
    %193 = vector.broadcast %192 : vector<1x64xf32> to vector<16x64xf32>
    %194 = arith.mulf %191, %193 : vector<16x64xf32>
    %c112_113 = arith.constant 112 : index
    %c0_114 = arith.constant 0 : index
    %195 = vector.load %arg14[%c112_113, %c0_114] : memref<144x256xf32, #tpu.memory_space<vmem>>, vector<16x64xf32>
    tpu.vector_store %arg14[%c112_113, %c0_114], %194 {strides = array<i32>} : memref<144x256xf32, #tpu.memory_space<vmem>>, vector<16x64xf32>,
    %196 = vector.extract_strided_slice %145 {offsets = [0, 9], sizes = [16, 55], strides = [1, 1]} : vector<16x64xf32> to vector<16x55xf32>
    %197 = vector.extract_strided_slice %145 {offsets = [0, 0], sizes = [16, 9], strides = [1, 1]} : vector<16x64xf32> to vector<16x9xf32>
    %198 = tpu.concatenate %196, %197 in 1 : vector<16x55xf32>, vector<16x9xf32> -> vector<16x64xf32>
    %c8_115 = arith.constant 8 : index
    %c0_116 = arith.constant 0 : index
    %199 = vector.load %arg4[%c8_115, %c0_116] : memref<9x64xf32, #tpu.memory_space<vmem>>, vector<1x64xf32>
    %200 = vector.broadcast %199 : vector<1x64xf32> to vector<16x64xf32>
    %201 = arith.mulf %198, %200 : vector<16x64xf32>
    %c128_117 = arith.constant 128 : index
    %c0_118 = arith.constant 0 : index
    %202 = vector.load %arg14[%c128_117, %c0_118] : memref<144x256xf32, #tpu.memory_space<vmem>>, vector<16x64xf32>
    tpu.vector_store %arg14[%c128_117, %c0_118], %201 {strides = array<i32>} : memref<144x256xf32, #tpu.memory_space<vmem>>, vector<16x64xf32>,
    %c0_119 = arith.constant 0 : index
    %c0_120 = arith.constant 0 : index
    %203 = vector.load %arg14[%c0_119, %c0_120] : memref<144x256xf32, #tpu.memory_space<vmem>>, vector<144x64xf32>
    %204 = arith.truncf %203 : vector<144x64xf32> to vector<144x64xbf16>
    %c0_121 = arith.constant 0 : index
    %c0_122 = arith.constant 0 : index
    %205 = vector.load %arg9[%c0_121, %c0_122] : memref<8x144xbf16, #tpu.memory_space<vmem>>, vector<8x144xbf16>
    %cst_123 = arith.constant dense<0.000000e+00> : vector<8x64xf32>
    %206 = tpu.matmul %205, %204, %cst_123 {dimension_numbers = #tpu.dot_dimension_numbers<[1], [0], [0], [1], [0, 0, 1, 1], [], []>} : vector<8x144xbf16>, vector<144x64xbf16>, vector<8x64xf32> -> vector<8x64xf32>
    %c16_124 = arith.constant 16 : index
    %c0_125 = arith.constant 0 : index
    %207 = vector.load %arg13[%c16_124, %c0_125] : memref<24x256xf32, #tpu.memory_space<vmem>>, vector<8x64xf32>
    tpu.vector_store %arg13[%c16_124, %c0_125], %206 {strides = array<i32>} : memref<24x256xf32, #tpu.memory_space<vmem>>, vector<8x64xf32>,
    %c0_126 = arith.constant 0 : index
    %c0_127 = arith.constant 0 : index
    %208 = vector.load %arg13[%c0_126, %c0_127] : memref<24x256xf32, #tpu.memory_space<vmem>>, vector<24x64xf32>
    %cst_128 = arith.constant 0.000000e+00 : f32
    %209 = vector.broadcast %cst_128 : f32 to vector<24x64xf32>
    %210 = arith.maximumf %208, %209 : vector<24x64xf32>
    %cst_129 = arith.constant dense<0.000000e+00> : vector<24xf32>
    %211 = vector.multi_reduction <add>, %210, %cst_129 [1] : vector<24x64xf32> to vector<24xf32>
    %212 = vector.shape_cast %211 : vector<24xf32> to vector<24x1xf32>
    %cst_130 = arith.constant 6.400000e+01 : f32
    %213 = vector.broadcast %cst_130 : f32 to vector<24x1xf32>
    %214 = arith.divf %212, %213 : vector<24x1xf32>
    %c0_131 = arith.constant 0 : index
    %c0_132 = arith.constant 0 : index
    %215 = vector.load %arg10[%c0_131, %c0_132] : memref<24x10xf32, #tpu.memory_space<vmem>>, vector<24x10xf32>
    %216 = vector.broadcast %214 : vector<24x1xf32> to vector<24x10xf32>
    %217 = arith.mulf %216, %215 : vector<24x10xf32>
    %cst_133 = arith.constant dense<0.000000e+00> : vector<10xf32>
    %218 = vector.multi_reduction <add>, %217, %cst_133 [0] : vector<24x10xf32> to vector<10xf32>
    %219 = vector.shape_cast %218 : vector<10xf32> to vector<1x10xf32>
    %c0_134 = arith.constant 0 : index
    %c0_135 = arith.constant 0 : index
    %220 = vector.load %arg11[%c0_134, %c0_135] : memref<1x10xf32, #tpu.memory_space<vmem>>, vector<1x10xf32>
    %221 = arith.addf %219, %220 : vector<1x10xf32>
    %222 = vector.shape_cast %221 : vector<1x10xf32> to vector<1x1x10xf32>
    %c0_136 = arith.constant 0 : index
    %c0_137 = arith.constant 0 : index
    %c0_138 = arith.constant 0 : index
    %223 = vector.load %arg12[%c0_136, %c0_137, %c0_138] : memref<1x1x10xf32, #tpu.memory_space<vmem>>, vector<1x1x10xf32>
    tpu.vector_store %arg12[%c0_136, %c0_137, %c0_138], %222 {strides = array<i32>} : memref<1x1x10xf32, #tpu.memory_space<vmem>>, vector<1x1x10xf32>,
    return
  }
  func.func @transform_0(%arg0: i32) -> (i32, i32) {
    %c0_i32 = arith.constant 0 : i32
    %c0_i32_0 = arith.constant 0 : i32
    return %c0_i32, %arg0 : i32, i32
  }
  func.func @transform_1(%arg0: i32) -> (i32, i32) {
    %c0_i32 = arith.constant 0 : i32
    %c0_i32_0 = arith.constant 0 : i32
    %c0_i32_1 = arith.constant 0 : i32
    return %c0_i32, %c0_i32_0 : i32, i32
  }
  func.func @transform_2(%arg0: i32) -> (i32, i32) {
    %c0_i32 = arith.constant 0 : i32
    %c0_i32_0 = arith.constant 0 : i32
    %c0_i32_1 = arith.constant 0 : i32
    return %c0_i32, %c0_i32_0 : i32, i32
  }
  func.func @transform_3(%arg0: i32) -> (i32, i32) {
    %c0_i32 = arith.constant 0 : i32
    %c0_i32_0 = arith.constant 0 : i32
    %c0_i32_1 = arith.constant 0 : i32
    return %c0_i32, %c0_i32_0 : i32, i32
  }
  func.func @transform_4(%arg0: i32) -> (i32, i32) {
    %c0_i32 = arith.constant 0 : i32
    %c0_i32_0 = arith.constant 0 : i32
    %c0_i32_1 = arith.constant 0 : i32
    return %c0_i32, %c0_i32_0 : i32, i32
  }
  func.func @transform_5(%arg0: i32) -> (i32, i32) {
    %c0_i32 = arith.constant 0 : i32
    %c0_i32_0 = arith.constant 0 : i32
    %c0_i32_1 = arith.constant 0 : i32
    return %c0_i32, %c0_i32_0 : i32, i32
  }
  func.func @transform_6(%arg0: i32) -> (i32, i32) {
    %c0_i32 = arith.constant 0 : i32
    %c0_i32_0 = arith.constant 0 : i32
    %c0_i32_1 = arith.constant 0 : i32
    return %c0_i32, %c0_i32_0 : i32, i32
  }
  func.func @transform_7(%arg0: i32) -> (i32, i32) {
    %c0_i32 = arith.constant 0 : i32
    %c0_i32_0 = arith.constant 0 : i32
    %c0_i32_1 = arith.constant 0 : i32
    return %c0_i32, %c0_i32_0 : i32, i32
  }
  func.func @transform_8(%arg0: i32) -> (i32, i32) {
    %c0_i32 = arith.constant 0 : i32
    %c0_i32_0 = arith.constant 0 : i32
    %c0_i32_1 = arith.constant 0 : i32
    return %c0_i32, %c0_i32_0 : i32, i32
  }
  func.func @transform_9(%arg0: i32) -> (i32, i32) {
    %c0_i32 = arith.constant 0 : i32
    %c0_i32_0 = arith.constant 0 : i32
    %c0_i32_1 = arith.constant 0 : i32
    return %c0_i32, %c0_i32_0 : i32, i32
  }
  func.func @transform_10(%arg0: i32) -> (i32, i32) {
    %c0_i32 = arith.constant 0 : i32
    %c0_i32_0 = arith.constant 0 : i32
    %c0_i32_1 = arith.constant 0 : i32
    return %c0_i32, %c0_i32_0 : i32, i32
  }
  func.func @transform_11(%arg0: i32) -> (i32, i32, i32) {
    %c0_i32 = arith.constant 0 : i32
    %c0_i32_0 = arith.constant 0 : i32
    %c0_i32_1 = arith.constant 0 : i32
    return %arg0, %c0_i32, %c0_i32_0 : i32, i32, i32
  }
}

</mosaic_0001>

<bundles_post_ra>
// kernel: condensenet_sconv_forward.1
= control target key start
LH: loop header
LB: loop body
LE: loop exit
PB: predicated region body
PF: predicated region fallthrough
CT: control target
= control target key end

     0   :  { %s2722_s0 = inlined_call_operand.vmem [shape: f32[8,512], index: 0, kind: input, shape index: {}]   ;;  %s2723_s1 = inlined_call_operand.vmem [shape: bf16[8,72], index: 1, kind: input, shape index: {}]   ;;  %s2724_s2 = inlined_call_operand.vmem [shape: f32[9,256], index: 2, kind: input, shape index: {}]   ;;  %s2725_s3 = inlined_call_operand.vmem [shape: f32[9,64], index: 3, kind: input, shape index: {}]   ;;  %s2726_s4 = inlined_call_operand.vmem [shape: bf16[16,8], index: 4, kind: input, shape index: {}]   ;;  %s2727_s5 = inlined_call_operand.vmem [shape: bf16[8,144], index: 5, kind: input, shape index: {}]   ;;  %s2728_s6 = inlined_call_operand.vmem [shape: bf16[256,64], index: 6, kind: input, shape index: {}]   ;;  %s2729_s7 = inlined_call_operand.vmem [shape: bf16[16,16], index: 7, kind: input, shape index: {}]   ;;  %s2730_s8 = inlined_call_operand.vmem [shape: bf16[8,144], index: 8, kind: input, shape index: {}]   ;;  %s2731_s9 = inlined_call_operand.vmem [shape: f32[24,10], index: 9, kind: input, shape index: {}]   ;;  %s2732_s10 = inlined_call_operand.vmem [shape: f32[1,10], index: 10, kind: input, shape index: {}]   ;;  %s2733_s11 = inlined_call_operand.hbm [shape: f32[2,1,10], index: 11, kind: output, shape index: {}]  }
   0x1   :  { %2740 = sst [smem:[#allocation7_spill]] %s2722_s0 }
   0x2   :  { %16 = vsyncpa [#allocation5], 0 }
   0x3   :  { %18 = vsyncpa [#allocation5 + $0x1], 0  ;;  %s2123_s17 = smov 0   ;;  %s2125_s18 = smov 0  }
   0x4   :  { %s2127_s19 = smov 0   ;;  %s2129_s20 = smov 0  }
   0x5 LB: > { %s2144_s21 = sadd.s32 4294967295, %s2035_s20   ;;  %s1797_s22 = sadd.s32 4294967294, %s2035_s20   ;;  %s2035_s20 = sphi %s2129_s20, %s2750_s20   ;;  %s2031_s19 = sphi %s2127_s19, %s2749_s19   ;;  %s2027_s18 = sphi %s2125_s18, %s2748_s18   ;;  %s2023_s17 = sphi %s2123_s17, %s2747_s17  }
   0x6   : > { %s2148_s23 = sadd.s32 1, %s2035_s20   ;;  %s267_s24 = sadd.s32 1, %s2031_s19 }
   0x7   : > { %s264_s25 = ssub.s32 %s2035_s20, %s2148_s23  ;;  %p277_p0 = scmp.ne.s32.totalorder %s2031_s19, %s2027_s18 }
   0x8   : > { %p265_p1 = scmp.eq.s32.totalorder %s264_s25, 0  ;;  %p278_p2 = scmp.eq.s32.totalorder %s2144_s21, 1 }
   0x9   : > { %p283_p3 = scmp.ne.s32.totalorder %s2027_s18, %s2023_s17  ;;  %p284_p4 = scmp.eq.s32.totalorder %s1797_s22, 1 }
   0xa   : > { %s2159_s26 = scalar_select %p265_p1, %s2031_s19, %s267_s24  }
   0xb   : > { %p2161_p5 = por %p278_p2, %p277_p0  ;;  %p2165_p6 = por %p284_p4, %p283_p3 }
   0xc   : > { %p1800_p7 = scmp.ge.s32.totalorder %s2035_s20, 1  ;;  %p341_p8 = scmp.lt.s32.totalorder %s2035_s20, 3 }
   0xe   : > { %p342_p9 = pnand %p1800_p7, %p341_p8 }
   0xf   : > { %s1801_s29 = sshll.u32 (!%p342_p9), %s2144_s21, 1  ;;  %s2743_s0 = sld [smem:[#allocation7_spill]] (!%p342_p9)  ;;  %v2043_v2 = vmov (!%p342_p9), 0   ;;  %v403_v3 = vlaneseq (!%p342_p9)  ;;  %v1803_v7 = vld [vmem:[%s2724_s2 + $0x1] ss:$8 sm:$0x3] (!%p342_p9) }
  0x10   : > { %345 = sbr.rel (%p342_p9) target bundleno = 2054 (0x806), region = 64  ;;  %p381_p10 = scmp.lt.s32.totalorder (!%p342_p9), %s1801_s29, 3  ;;  %680 = vmatprep.mubr.bf16.mxu0 (!%p342_p9), %v2043_v2  ;;  %v401_v8 = vld [vmem:[%s2724_s2] ss:$8 sm:$0x3] (!%p342_p9)  ;;  %vm422_vm0 = vcmask (!%p342_p9), 130048  }
  0x11   : > { %s2037_s15 = smov (!%p342_p9), 16   ;;  %s2038_s16 = smov (!%p342_p9), 17   ;;  %v404_v4 = vshrl.u32 (!%p342_p9), %v403_v3, 7  ;;  %vm396_vm1 = vcmask (!%p342_p9), 138240   ;;  %vm449_vm2 = vcmask (!%p342_p9), 121856   ;;  %vm476_vm3 = vcmask (!%p342_p9), 7168  }
  0x12   : > { %s2736_s22 = smov (!%p342_p9), 15   ;;  %s2734_s24 = smov (!%p342_p9), 1   ;;  %v1804_v25 = vld [vmem:[%s2724_s2 + $0x2] ss:$8 sm:$0x3] (!%p342_p9)  ;;  %vm504_vm4 = vcmask (!%p342_p9), 1039360  }
  0x13   : > { %s2738_s25 = smov (!%p342_p9), 127   ;;  %s2045_s12 = smov (!%p342_p9), 111   ;;  %v2212_v5 = vsub.s32 (!%p342_p9), 0, %v404_v4  ;;  %v2214_v6 = vsub.s32 (!%p342_p9), 1, %v404_v4  ;;  %vm531_vm5 = vcmask (!%p342_p9), 924672   ;;  %vm558_vm6 = vcmask (!%p342_p9), 916480  }
  0x14   : > { %v1805_v26 = vld [vmem:[%s2724_s2 + $0x3] ss:$8 sm:$0x3] (!%p342_p9)  ;;  %v1806_v35 = vld [vmem:[%s2724_s2 + $0x5] ss:$8 sm:$0x3] (!%p342_p9) }
  0x15   : > { %v433_v11 = vrot.slane (!%p342_p9), %v1803_v7, %v2212_v5  ;;  %v437_v12 = vrot.slane (!%p342_p9), %v1803_v7, %v2214_v6  ;;  %v406_v13 = vrot.slane (!%p342_p9), %v401_v8, %v2212_v5  ;;  %v410_v14 = vrot.slane (!%p342_p9), %v401_v8, %v2214_v6  ;;  %v1807_v56 = vld [vmem:[%s2724_s2 + $0x6] ss:$8 sm:$0x3] (!%p342_p9)  ;;  %v1808_v57 = vld [vmem:[%s2724_s2 + $0x7] ss:$8 sm:$0x3] (!%p342_p9) }
  0x16   : > { %v460_v31 = vrot.slane (!%p342_p9), %v1804_v25, %v2212_v5  ;;  %v464_v32 = vrot.slane (!%p342_p9), %v1804_v25, %v2214_v6  ;;  %v487_v33 = vrot.slane (!%p342_p9), %v1805_v26, %v2212_v5  ;;  %v491_v34 = vrot.slane (!%p342_p9), %v1805_v26, %v2214_v6  ;;  %v1809_v7 = vld [vmem:[%s2724_s2 + $0x10] ss:$8 sm:$0x3] (!%p342_p9)  ;;  %s2056_s13 = smov (!%p342_p9), 121  }
  0x17   : > { %s2752_s29 = smov (!%p381_p10, %s1801_s29), 3  ;;  %v516_v42 = vrot.slane %v1806_v35, %v2212_v5  ;;  %v520_v43 = vrot.slane %v1806_v35, %v2214_v6  ;;  %v543_v62 = vrot.slane %v1807_v56, %v2212_v5  ;;  %v547_v63 = vrot.slane %v1807_v56, %v2214_v6  ;;  %v1958_v56 = vld [vmem:[%s2728_s6 + $0x50] sm:$0xff]  }
  0x18   : > { %s1802_s30 = sshll.u32 %s2752_s29, 3  ;;  %s2042_s29 = smov 113   ;;  %v570_v3 = vrot.slane %v1808_v57, %v2212_v5  ;;  %v574_v4 = vrot.slane %v1808_v57, %v2214_v6  ;;  %vm585_vm7 = vcmask 908288   ;;  %vm641_vm8 = vcmask 1043456   ;;  %v1959_v57 = vld [vmem:[%s2728_s6 + $0x10] sm:$0xff]  }
  0x19   : > { %s384_s14 = scalar_lea.vmem %s2743_s0, %s1802_s30  ;;  %s2044_s30 = smov 112   ;;  %vm637_vm9 = vcmask 588800   ;;  %vm704_vm10 = vcmask 64512   ;;  %vm2047_vm11 = vmmov 0   ;;  %vm1355_vm12 = vcmask 523264  }
  0x1a   : > { %v2175_v0 = vld [vmem:[%s384_s14 + $0x8] sm:$0xff]  ;;  %v2181_v1 = vld [vmem:[%s384_s14] sm:$0xff]  ;;  %s2048_s14 = smov 73   ;;  %s2052_s0 = smov 71   ;;  %vm1430_vm13 = vcmask 72704   ;;  %vm1477_vm14 = vcmask 56320  }
  0x1b   : > { %417 = vrot.lane.b32.xlu1 %v2175_v0, %s2037_s15  ;;  %390 = vrot.lane.b32.xlu0 %v2175_v0, %s2038_s16  ;;  %vm1526_vm15 = vcmask 515072  }
  0x1f   : > { %420 = vrot.lane.b32.xlu1 %v2181_v1, %s2037_s15  ;;  %394 = vrot.lane.b32.xlu0 %v2181_v1, %s2038_s16 }
  0x23   : > { %447 = vrot.lane.b32.xlu1 %v2181_v1, %s2736_s22  ;;  %444 = vrot.lane.b32.xlu0 %v2175_v0, %s2736_s22  ;;  %s2744_s22 = smov 15  }
  0x27   : > { %474 = vrot.lane.b32.xlu1 %v2181_v1, %s2734_s24  ;;  %471 = vrot.lane.b32.xlu0 %v2175_v0, %s2734_s24  ;;  %s2745_s24 = smov 1  }
  0x2b   : > { %502 = vrot.lane.b32.xlu1 %v2175_v0, %s2738_s25  ;;  %500 = vrot.lane.b32.xlu0 %v2181_v1, %s2738_s25 }
  0x2f   : > { %529 = vrot.lane.b32.xlu1 %v2175_v0, %s2042_s29  ;;  %527 = vrot.lane.b32.xlu0 %v2181_v1, %s2042_s29 }
  0x33   : > { %556 = vrot.lane.b32.xlu1 %v2175_v0, %s2044_s30  ;;  %554 = vrot.lane.b32.xlu0 %v2181_v1, %s2044_s30 }
  0x37   : > { %583 = vrot.lane.b32.xlu1 %v2175_v0, %s2045_s12  ;;  %581 = vrot.lane.b32.xlu0 %v2181_v1, %s2045_s12 }
  0x8d   : > { %v418_v9 = vpop.permute.xlu1 %417  ;;  %v391_v10 = vpop.permute.xlu0 %390 }
  0x91   : > { %v421_v15 = vpop.permute.xlu1 %420  ;;  %v395_v16 = vpop.permute.xlu0 %394 }
  0x92   : > { %v423_v17 = vsel %vm422_vm0, %v421_v15, %v418_v9  ;;  %v426_v18 = vsel %vm422_vm0, %v418_v9, %v421_v15  ;;  %v397_v19 = vsel %vm396_vm1, %v395_v16, %v391_v10  ;;  %v400_v20 = vsel %vm396_vm1, %v391_v10, %v395_v16 }
  0x93   : > { %v440_v21 = vmul.f32 %v433_v11, %v426_v18  ;;  %v441_v22 = vmul.f32 %v437_v12, %v423_v17  ;;  %v413_v23 = vmul.f32 %v406_v13, %v400_v20  ;;  %v414_v24 = vmul.f32 %v410_v14, %v397_v19 }
  0x94   : > { %v597_v12 = vrot.slane %v1809_v7, %v2212_v5  ;;  %v601_v13 = vrot.slane %v1809_v7, %v2214_v6 }
  0x95   : > { %v448_v27 = vpop.permute.xlu1 %447  ;;  %v445_v28 = vpop.permute.xlu0 %444  ;;  %v627_v29 = vpack.c.bf16 %v441_v22, %v414_v24  ;;  %v626_v30 = vpack.c.bf16 %v440_v21, %v413_v23 }
  0x96   : > { %v450_v36 = vsel %vm449_vm2, %v448_v27, %v445_v28  ;;  %v453_v37 = vsel %vm449_vm2, %v445_v28, %v448_v27 }
  0x97   : > { %648 = vmatprep.subr.bf16.mxu0 %v627_v29  ;;  %v467_v44 = vmul.f32 %v460_v31, %v453_v37  ;;  %v468_v45 = vmul.f32 %v464_v32, %v450_v36  ;;  %v636_v29 = vld [vmem:[%s2723_s1] sm:$0xf] }
  0x98   : > { %649 = vmatpush1.bf16.msra.mxu0 %v626_v30 }
  0x99   : > { %v475_v38 = vpop.permute.xlu1 %474  ;;  %v472_v39 = vpop.permute.xlu0 %471 }
  0x9a   : > { %v477_v40 = vsel %vm476_vm3, %v475_v38, %v472_v39  ;;  %v480_v41 = vsel %vm476_vm3, %v472_v39, %v475_v38  ;;  %v1951_v39 = vld [vmem:[%s2726_s4] sm:$0xff]  }
  0x9b   : > { %v494_v46 = vmul.f32 %v487_v33, %v480_v41  ;;  %v495_v47 = vmul.f32 %v491_v34, %v477_v40 }
  0x9d   : > { %v503_v48 = vpop.permute.xlu1 %502  ;;  %v501_v49 = vpop.permute.xlu0 %500  ;;  %v629_v50 = vpack.c.bf16 %v495_v47, %v468_v45  ;;  %v628_v51 = vpack.c.bf16 %v494_v46, %v467_v44 }
  0x9e   : > { %v505_v52 = vsel %vm504_vm4, %v501_v49, %v503_v48  ;;  %v509_v53 = vsel %vm504_vm4, %v503_v48, %v501_v49 }
  0x9f   : > { %v523_v54 = vmul.f32 %v516_v42, %v505_v52  ;;  %v524_v55 = vmul.f32 %v520_v43, %v509_v53  ;;  %650 = vmatprep.subr.bf16.mxu0 %v629_v50  ;;  %v2366_v50 = vld [vmem:[%s2727_s5] sm:$0xff] }
  0xa0   : > { %651 = vmatpush1.bf16.msra.mxu0 %v628_v51  ;;  %v1823_v51 = vcombine.high %v2366_v50, %v2366_v50  ;;  %v1954_v52 = vld [vmem:[%s2728_s6 + $0x40] sm:$0xff]  }
  0xa1   : > { %v530_v58 = vpop.permute.xlu1 %529  ;;  %v528_v59 = vpop.permute.xlu0 %527  ;;  %v631_v60 = vpack.c.bf16 %v524_v55, %v2175_v0  ;;  %v630_v61 = vpack.c.bf16 %v523_v54, %v2181_v1  ;;  %v1955_v53 = vld [vmem:[%s2728_s6] sm:$0xff]   ;;  %v1956_v54 = vld [vmem:[%s2728_s6 + $0x48] sm:$0xff]  }
  0xa2   : > { %v532_v8 = vsel %vm531_vm5, %v528_v59, %v530_v58  ;;  %v536_v0 = vsel %vm531_vm5, %v530_v58, %v528_v59  ;;  %1824 = vmatprep.mubr.msk.bf16.mxu1 %vm422_vm0, %v1823_v51  ;;  %v1957_v55 = vld [vmem:[%s2728_s6 + $0x8] sm:$0xff]   ;;  %v1960_v58 = vld [vmem:[%s2728_s6 + $0x58] sm:$0xff]  }
  0xa3   : > { %652 = vmatprep.subr.bf16.mxu0 %v631_v60  ;;  %v550_v14 = vmul.f32 %v543_v62, %v532_v8  ;;  %v551_v15 = vmul.f32 %v547_v63, %v536_v0  ;;  %v1961_v59 = vld [vmem:[%s2728_s6 + $0x18] sm:$0xff]   ;;  %v1962_v60 = vld [vmem:[%s2728_s6 + $0x60] sm:$0xff]  }
  0xa4   : > { %653 = vmatpush1.bf16.msra.mxu0 %v630_v61  ;;  %v1963_v61 = vld [vmem:[%s2728_s6 + $0x20] sm:$0xff]  }
  0xa5   : > { %v557_v1 = vpop.permute.xlu1 %556  ;;  %v555_v9 = vpop.permute.xlu0 %554  ;;  %v1818_v0 = vld [vmem:[%s2724_s2 + $0x5] ss:$8 sm:$0x3] }
  0xa6   : > { %v559_v10 = vsel %vm558_vm6, %v555_v9, %v557_v1  ;;  %v563_v11 = vsel %vm558_vm6, %v557_v1, %v555_v9 }
  0xa7   : > { %v577_v16 = vmul.f32 %v570_v3, %v559_v10  ;;  %v578_v17 = vmul.f32 %v574_v4, %v563_v11  ;;  %v2417_v10 = vrot.slane %v1818_v0, %v2212_v5  ;;  %v2420_v11 = vrot.slane %v1818_v0, %v2214_v6 }
  0xa9   : > { %v584_v18 = vpop.permute.xlu1 %583  ;;  %v582_v19 = vpop.permute.xlu0 %581  ;;  %v633_v20 = vpack.c.bf16 %v578_v17, %v551_v15  ;;  %v632_v21 = vpack.c.bf16 %v577_v16, %v550_v14 }
  0xaa   : > { %v586_v22 = vsel %vm585_vm7, %v582_v19, %v584_v18  ;;  %v590_v23 = vsel %vm585_vm7, %v584_v18, %v582_v19 }
  0xab   : > { %v604_v24 = vmul.f32 %v597_v12, %v586_v22  ;;  %v605_v25 = vmul.f32 %v601_v13, %v590_v23  ;;  %654 = vmatprep.subr.bf16.mxu0 %v633_v20  ;;  %v1819_v12 = vld [vmem:[%s2724_s2 + $0x6] ss:$8 sm:$0x3] }
  0xac   : > { %655 = vmatpush1.bf16.msra.mxu0 %v632_v21  ;;  %v2434_v19 = vrot.slane %v1819_v12, %v2212_v5  ;;  %v2437_v20 = vrot.slane %v1819_v12, %v2214_v6  ;;  %v1820_v21 = vld [vmem:[%s2724_s2 + $0x7] ss:$8 sm:$0x3] }
  0xad   : > { %v635_v26 = vpack.c.bf16 %v605_v25, %v605_v25  ;;  %v634_v27 = vpack.c.bf16 %v604_v24, %v604_v24 }
  0xaf   : > { %1810 = vmatprep.subr.msk.bf16.mxu0 %vm641_vm8, %v635_v26  ;;  %v643_v28 = vsel %vm641_vm8, %v634_v27, 0 }
  0xb0   : > { %657 = vmatpush1.bf16.msra.mxu0 %v643_v28  ;;  %v2454_v28 = vrot.slane %v1820_v21, %v2212_v5 }
  0xb3   : > { %1811 = vmatmul.mubr.msk.bf16.vlgmr.msra.gmra.mrb[0].mxu0 %vm637_vm9, %v636_v29  ;;  %v2457_v29 = vrot.slane %v1820_v21, %v2214_v6 }
  0xb4   : > { %746 = vmatprep.mubr.bf16.mxu0 %v2043_v2 }
 0x186   : > { %v2280_v30 = vpop.f32.mrb[0].mxu0 }
 0x187   : > { %689 = vst [vmem:[#allocation2] sm:$0xff] %v2280_v30  ;;  %v2283_v31 = vpop.f32.mrb[1].mxu0  ;;  %v693_v32 = vmax.f32 %v2280_v30, 0.0 }
 0x188   : > { %v686_v33 = vpop.f32.mrb[2].mxu0  ;;  %v694_v34 = vmax.f32 %v2283_v31, 0.0 }
 0x189   : > { %v687_v35 = vpop.f32.mrb[3].mxu0  ;;  %v695_v36 = vpack.c.bf16 %v693_v32, %v693_v32  ;;  %v783_v32 = vld [vmem:[%s2724_s2] ss:$8 sm:$0x3] }
 0x18a   : > { %v696_v37 = vpack.c.bf16 %v694_v34, %v694_v34 }
 0x18b   : > { %v709_v38 = vsel %vm641_vm8, %v695_v36, 0 }
 0x18c   : > { %1813 = vmatprep.subr.msk.bf16.mxu0 %vm641_vm8, %v696_v37 }
 0x18d   : > { %715 = vmatpush1.bf16.msra.mxu0 %v709_v38 }
 0x18e   : > { %1857 = vmatprep.subr.bf16.mxu0 %v1954_v52 }
 0x190   : > { %1814 = vmatmul.mubr.msk.bf16.vlgmr.msra.gmra.mrb[4].mxu0 %vm704_vm10, %v1951_v39  ;;  %v788_v39 = vrot.slane %v783_v32, %v2212_v5 }
 0x191   : > { %1858 = vmatpush3.bf16.msra.mxu0 %v1955_v53 }
 0x192   : > { %1859 = vmatprep.subr.bf16.mxu0 %v1956_v54 }
 0x195   : > { %1860 = vmatpush3.bf16.msra.mxu0 %v1957_v55  ;;  %v1816_v55 = vld [vmem:[%s2724_s2 + $0x2] ss:$8 sm:$0x3] }
 0x196   : > { %1861 = vmatprep.subr.bf16.mxu0 %v1958_v56 }
 0x199   : > { %1862 = vmatpush3.bf16.msra.mxu0 %v1959_v57 }
 0x19a   : > { %1863 = vmatprep.subr.bf16.mxu0 %v1960_v58 }
 0x19d   : > { %1864 = vmatpush3.bf16.msra.mxu0 %v1961_v59 }
 0x19e   : > { %1865 = vmatprep.subr.bf16.mxu0 %v1962_v60 }
 0x1a1   : > { %1866 = vmatpush3.bf16.msra.mxu0 %v1963_v61 }
 0x263   : > { %v748_v40 = vpop.f32.mrb[4].mxu0 }
 0x264   : > { %v2293_v41 = vmax.f32 %v748_v40, 0.0  ;;  %v750_v42 = vpop.f32.mrb[5].mxu0  ;;  %v792_v40 = vrot.slane %v783_v32, %v2214_v6 }
 0x265   : > { %v2295_v43 = vmax.f32 %v750_v42, 0.0  ;;  %v752_v44 = vpop.f32.mrb[6].mxu0  ;;  %v1815_v42 = vld [vmem:[%s2724_s2 + $0x1] ss:$8 sm:$0x3] }
 0x266   : > { %917 = vst [vmem:[#allocation3 + $0x80] sm:$0xff] %v2293_v41  ;;  %v2298_v45 = vmax.f32 %v752_v44, 0.0  ;;  %771 = vrot.lane.b32.xlu0 %v2293_v41, %s2038_s16  ;;  %v754_v46 = vpop.f32.mrb[7].mxu0  ;;  %v826_v53 = vrot.slane %v1815_v42, %v2212_v5  ;;  %v830_v54 = vrot.slane %v1815_v42, %v2214_v6 }
 0x267   : > { %v2302_v47 = vmax.f32 %v754_v46, 0.0  ;;  %923 = vrot.lane.b32.xlu1 %v2295_v43, %s2738_s25 }
 0x268   : > { %919 = vst [vmem:[#allocation3 + $0x90] sm:$0xff] %v2298_v45  ;;  %v1117_v48 = vpack.c.bf16 %v2298_v45, %v2293_v41 }
 0x269   : > { %v1118_v49 = vpack.c.bf16 %v2302_v47, %v2295_v43 }
 0x26a   : > { %809 = vrot.lane.b32.xlu0 %v2293_v41, %s2037_s15 }
 0x26b   : > { %961 = vrot.lane.b32.xlu1 %v2295_v43, %s2042_s29 }
 0x26e   : > { %847 = vrot.lane.b32.xlu0 %v2293_v41, %s2744_s22 }
 0x26f   : > { %999 = vrot.lane.b32.xlu1 %v2295_v43, %s2044_s30 }
 0x272   : > { %885 = vrot.lane.b32.xlu0 %v2293_v41, %s2745_s24 }
 0x273   : > { %773 = vrot.lane.b32.xlu1 %v2298_v45, %s2038_s16 }
 0x276   : > { %921 = vrot.lane.b32.xlu0 %v2293_v41, %s2738_s25 }
 0x277   : > { %811 = vrot.lane.b32.xlu1 %v2298_v45, %s2037_s15 }
 0x27a   : > { %959 = vrot.lane.b32.xlu0 %v2293_v41, %s2042_s29 }
 0x27b   : > { %849 = vrot.lane.b32.xlu1 %v2298_v45, %s2744_s22 }
 0x27e   : > { %997 = vrot.lane.b32.xlu0 %v2293_v41, %s2044_s30 }
 0x27f   : > { %887 = vrot.lane.b32.xlu1 %v2298_v45, %s2745_s24 }
 0x282   : > { %763 = vrot.lane.b32.xlu0 %v2295_v43, %s2038_s16 }
 0x283   : > { %765 = vrot.lane.b32.xlu1 %v2302_v47, %s2038_s16  ;;  %s2746_s16 = smov 127  }
 0x286   : > { %803 = vrot.lane.b32.xlu0 %v2295_v43, %s2037_s15 }
 0x287   : > { %805 = vrot.lane.b32.xlu1 %v2302_v47, %s2037_s15  ;;  %s2051_s15 = smov 8  }
 0x28a   : > { %841 = vrot.lane.b32.xlu0 %v2295_v43, %s2744_s22 }
 0x28b   : > { %843 = vrot.lane.b32.xlu1 %v2302_v47, %s2744_s22  ;;  %s2050_s22 = smov 72  }
 0x28e   : > { %879 = vrot.lane.b32.xlu0 %v2295_v43, %s2745_s24 }
 0x28f   : > { %881 = vrot.lane.b32.xlu1 %v2302_v47, %s2745_s24 }
 0x292   : > { %1035 = vrot.lane.b32.xlu0 %v2293_v41, %s2045_s12 }
 0x293   : > { %1037 = vrot.lane.b32.xlu1 %v2295_v43, %s2045_s12 }
 0x296   : > { %925 = vrot.lane.b32.xlu0 %v2298_v45, %s2738_s25 }
 0x297   : > { %927 = vrot.lane.b32.xlu1 %v2302_v47, %s2738_s25  ;;  %s2053_s25 = smov 7  }
 0x29a   : > { %963 = vrot.lane.b32.xlu0 %v2298_v45, %s2042_s29 }
 0x29b   : > { %965 = vrot.lane.b32.xlu1 %v2302_v47, %s2042_s29  ;;  %s2049_s29 = smov 9  }
 0x29e   : > { %1001 = vrot.lane.b32.xlu0 %v2298_v45, %s2044_s30 }
 0x29f   : > { %1003 = vrot.lane.b32.xlu1 %v2302_v47, %s2044_s30  ;;  %s2055_s30 = smov 63  }
 0x2a2   : > { %1039 = vrot.lane.b32.xlu0 %v2298_v45, %s2045_s12 }
 0x2a3   : > { %1041 = vrot.lane.b32.xlu1 %v2302_v47, %s2045_s12  ;;  %s2054_s12 = smov 65  }
 0x2d8   : > { %v772_v62 = vpop.permute.xlu0 %771 }
 0x2d9   : > { %v924_v63 = vpop.permute.xlu1 %923 }
 0x2dc   : > { %v810_v3 = vpop.permute.xlu0 %809 }
 0x2dd   : > { %v962_v4 = vpop.permute.xlu1 %961 }
 0x2e0   : > { %v2409_v7 = vpop.permute.xlu0 %847 }
 0x2e1   : > { %v1000_v8 = vpop.permute.xlu1 %999 }
 0x2e4   : > { %v2414_v1 = vpop.permute.xlu0 %885 }
 0x2e5   : > { %v774_v9 = vpop.permute.xlu1 %773 }
 0x2e8   : > { %v922_v13 = vpop.permute.xlu0 %921 }
 0x2e9   : > { %v929_v14 = vsel %vm504_vm4, %v922_v13, %v924_v63  ;;  %v937_v15 = vsel %vm504_vm4, %v924_v63, %v922_v13  ;;  %v812_v16 = vpop.permute.xlu1 %811  ;;  %v1817_v13 = vld [vmem:[%s2724_s2 + $0x3] ss:$8 sm:$0x3] }
 0x2ea   : > { %v2428_v17 = vmul.f32 %v2417_v10, %v929_v14  ;;  %v2431_v18 = vmul.f32 %v2420_v11, %v937_v15 }
 0x2ec   : > { %955 = vst [vmem:[#allocation3 + $0xa0] sm:$0xff] %v2428_v17  ;;  %v960_v22 = vpop.permute.xlu0 %959 }
 0x2ed   : > { %v967_v23 = vsel %vm531_vm5, %v960_v22, %v962_v4  ;;  %v975_v24 = vsel %vm531_vm5, %v962_v4, %v960_v22  ;;  %v2445_v25 = vpop.permute.xlu1 %849  ;;  %v868_v4 = vrot.slane %v1816_v55, %v2214_v6 }
 0x2ee   : > { %v2448_v26 = vmul.f32 %v2434_v19, %v967_v23  ;;  %v2451_v27 = vmul.f32 %v2437_v20, %v975_v24 }
 0x2f0   : > { %993 = vst [vmem:[#allocation3 + $0xc0] sm:$0xff] %v2448_v26  ;;  %v998_v33 = vpop.permute.xlu0 %997 }
 0x2f1   : > { %v1005_v34 = vsel %vm558_vm6, %v998_v33, %v1000_v8  ;;  %v1013_v35 = vsel %vm558_vm6, %v1000_v8, %v998_v33  ;;  %v2465_v36 = vpop.permute.xlu1 %887 }
 0x2f2   : > { %v2468_v37 = vmul.f32 %v2454_v28, %v1005_v34  ;;  %v2471_v38 = vmul.f32 %v2457_v29, %v1013_v35  ;;  %v906_v34 = vrot.slane %v1817_v13, %v2214_v6 }
 0x2f4   : > { %1031 = vst [vmem:[#allocation3 + $0xe0] sm:$0xff] %v2468_v37  ;;  %v764_v44 = vpop.permute.xlu0 %763 }
 0x2f5   : > { %v775_v46 = vsel %vm396_vm1, %v772_v62, %v764_v44  ;;  %v781_v51 = vsel %vm396_vm1, %v764_v44, %v772_v62  ;;  %v766_v52 = vpop.permute.xlu1 %765  ;;  %v864_v62 = vrot.slane %v1816_v55, %v2212_v5 }
 0x2f6   : > { %v795_v56 = vmul.f32 %v788_v39, %v781_v51  ;;  %v796_v57 = vmul.f32 %v792_v40, %v775_v46  ;;  %v776_v58 = vsel %vm396_vm1, %v774_v9, %v766_v52  ;;  %v782_v59 = vsel %vm396_vm1, %v766_v52, %v774_v9 }
 0x2f7   : > { %v797_v60 = vmul.f32 %v788_v39, %v782_v59  ;;  %v798_v61 = vmul.f32 %v792_v40, %v776_v58  ;;  %vm1574_vm1 = vcmask 457728  }
 0x2f8   : > { %799 = vst [vmem:[#allocation3] sm:$0xff] %v795_v56  ;;  %v804_v63 = vpop.permute.xlu0 %803 }
 0x2f9   : > { %801 = vst [vmem:[#allocation3 + $0x10] sm:$0xff] %v797_v60  ;;  %v813_v8 = vsel %vm422_vm0, %v810_v3, %v804_v63  ;;  %v819_v0 = vsel %vm422_vm0, %v804_v63, %v810_v3  ;;  %v806_v12 = vpop.permute.xlu1 %805  ;;  %v1110_v14 = vpack.c.bf16 %v798_v61, %v796_v57  ;;  %v1109_v9 = vpack.c.bf16 %v797_v60, %v795_v56 }
 0x2fa   : > { %v833_v15 = vmul.f32 %v826_v53, %v819_v0  ;;  %v834_v21 = vmul.f32 %v830_v54, %v813_v8  ;;  %v814_v22 = vsel %vm422_vm0, %v812_v16, %v806_v12  ;;  %v820_v23 = vsel %vm422_vm0, %v806_v12, %v812_v16 }
 0x2fb   : > { %v835_v24 = vmul.f32 %v826_v53, %v820_v23  ;;  %v836_v32 = vmul.f32 %v830_v54, %v814_v22  ;;  %1137 = vmatprep.subr.bf16.mxu1 %v1110_v14  ;;  %v902_v3 = vrot.slane %v1817_v13, %v2212_v5 }
 0x2fc   : > { %837 = vst [vmem:[#allocation3 + $0x20] sm:$0xff] %v833_v15  ;;  %v842_v33 = vpop.permute.xlu0 %841  ;;  %1138 = vmatpush1.bf16.msra.mxu1 %v1109_v9 }
 0x2fd   : > { %839 = vst [vmem:[#allocation3 + $0x30] sm:$0xff] %v835_v24  ;;  %v851_v35 = vsel %vm449_vm2, %v2409_v7, %v842_v33  ;;  %v857_v39 = vsel %vm449_vm2, %v842_v33, %v2409_v7  ;;  %v844_v40 = vpop.permute.xlu1 %843  ;;  %v1112_v42 = vpack.c.bf16 %v836_v32, %v834_v21  ;;  %v1111_v16 = vpack.c.bf16 %v835_v24, %v833_v15  ;;  %v1821_v7 = vld [vmem:[%s2724_s2 + $0x10] ss:$8 sm:$0x3] }
 0x2fe   : > { %v871_v44 = vmul.f32 %v864_v62, %v857_v39  ;;  %v872_v46 = vmul.f32 %v868_v4, %v851_v35  ;;  %v852_v51 = vsel %vm449_vm2, %v2445_v25, %v844_v40  ;;  %v858_v52 = vsel %vm449_vm2, %v844_v40, %v2445_v25 }
 0x2ff   : > { %v873_v53 = vmul.f32 %v864_v62, %v858_v52  ;;  %v874_v54 = vmul.f32 %v868_v4, %v852_v51  ;;  %1139 = vmatprep.subr.bf16.mxu1 %v1112_v42  ;;  %v1058_v0 = vrot.slane %v1821_v7, %v2212_v5  ;;  %v1062_v12 = vrot.slane %v1821_v7, %v2214_v6 }
 0x300   : > { %875 = vst [vmem:[#allocation3 + $0x40] sm:$0xff] %v871_v44  ;;  %v880_v55 = vpop.permute.xlu0 %879  ;;  %1140 = vmatpush1.bf16.msra.mxu1 %v1111_v16  ;;  %v1822_v52 = vcombine.low %v2366_v50, %v2366_v50  ;;  %v1967_v50 = vld [vmem:[%s2728_s6 + $0x30] sm:$0xff]   ;;  %vm1598_vm2 = vcmask 449536  }
 0x301   : > { %877 = vst [vmem:[#allocation3 + $0x50] sm:$0xff] %v873_v53  ;;  %v889_v56 = vsel %vm476_vm3, %v2414_v1, %v880_v55  ;;  %v895_v57 = vsel %vm476_vm3, %v880_v55, %v2414_v1  ;;  %v882_v58 = vpop.permute.xlu1 %881  ;;  %v1114_v59 = vpack.c.bf16 %v874_v54, %v872_v46  ;;  %v1113_v25 = vpack.c.bf16 %v873_v53, %v871_v44  ;;  %v1966_v53 = vld [vmem:[%s2728_s6 + $0x70] sm:$0xff]   ;;  %v1968_v54 = vld [vmem:[%s2728_s6 + $0x78] sm:$0xff]  }
 0x302   : > { %v909_v60 = vmul.f32 %v902_v3, %v895_v57  ;;  %v910_v61 = vmul.f32 %v906_v34, %v889_v56  ;;  %v890_v63 = vsel %vm476_vm3, %v2465_v36, %v882_v58  ;;  %v896_v62 = vsel %vm476_vm3, %v882_v58, %v2465_v36  ;;  %v1969_v55 = vld [vmem:[%s2728_s6 + $0x38] sm:$0xff]  }
 0x303   : > { %v911_v4 = vmul.f32 %v902_v3, %v896_v62  ;;  %v912_v8 = vmul.f32 %v906_v34, %v890_v63  ;;  %1141 = vmatprep.subr.bf16.mxu1 %v1114_v59 }
 0x304   : > { %913 = vst [vmem:[#allocation3 + $0x60] sm:$0xff] %v909_v60  ;;  %v1036_v1 = vpop.permute.xlu0 %1035  ;;  %1142 = vmatpush1.bf16.msra.mxu1 %v1113_v25 }
 0x305   : > { %915 = vst [vmem:[#allocation3 + $0x70] sm:$0xff] %v911_v4  ;;  %v1038_v13 = vpop.permute.xlu1 %1037  ;;  %v1116_v14 = vpack.c.bf16 %v912_v8, %v910_v61  ;;  %v1115_v9 = vpack.c.bf16 %v911_v4, %v909_v60  ;;  %v2046_v60 = vmov 0.0  }
 0x306   : > { %v1043_v15 = vsel %vm585_vm7, %v1036_v1, %v1038_v13  ;;  %v1051_v21 = vsel %vm585_vm7, %v1038_v13, %v1036_v1 }
 0x307   : > { %v1065_v22 = vmul.f32 %v1058_v0, %v1043_v15  ;;  %v1066_v36 = vmul.f32 %v1062_v12, %v1051_v21  ;;  %1143 = vmatprep.subr.bf16.mxu1 %v1116_v14  ;;  %v1970_v14 = vld [vmem:[%s2729_s7] sm:$0xff]  }
 0x308   : > { %v926_v23 = vpop.permute.xlu0 %925  ;;  %1144 = vmatpush1.bf16.msra.mxu1 %v1115_v9 }
 0x309   : > { %1069 = vst [vmem:[#allocation3 + $0x100] sm:$0xff] %v1065_v22  ;;  %v928_v5 = vpop.permute.xlu1 %927  ;;  %1145 = vmatprep.subr.bf16.mxu1 %v1118_v49 }
 0x30a   : > { %v930_v6 = vsel %vm504_vm4, %v926_v23, %v928_v5  ;;  %v938_v24 = vsel %vm504_vm4, %v928_v5, %v926_v23  ;;  %v2596_v5 = vld [vmem:[%s2730_s8] sm:$0xff]  ;;  %vm1727_vm4 = vcmask 73728  }
 0x30b   : > { %v953_v32 = vmul.f32 %v2417_v10, %v930_v6  ;;  %v954_v33 = vmul.f32 %v2420_v11, %v938_v24  ;;  %v1852_v6 = vcombine.high %v2596_v5, %v2596_v5 }
 0x30c   : > { %v964_v3 = vpop.permute.xlu0 %963  ;;  %1146 = vmatpush1.bf16.msra.mxu1 %v1117_v48 }
 0x30d   : > { %957 = vst [vmem:[#allocation3 + $0xb0] sm:$0xff] %v953_v32  ;;  %v966_v34 = vpop.permute.xlu1 %965  ;;  %v1120_v35 = vpack.c.bf16 %v954_v33, %v2431_v18  ;;  %v1119_v43 = vpack.c.bf16 %v953_v32, %v2428_v17 }
 0x30e   : > { %v968_v47 = vsel %vm531_vm5, %v964_v3, %v966_v34  ;;  %v976_v49 = vsel %vm531_vm5, %v966_v34, %v964_v3  ;;  %v1843_v34 = vld [vmem:[%s2725_s3] ss:$0 sm:$0xff] }
 0x30f   : > { %v991_v39 = vmul.f32 %v2434_v19, %v968_v47  ;;  %v992_v10 = vmul.f32 %v2437_v20, %v976_v49  ;;  %1147 = vmatprep.subr.bf16.mxu1 %v1120_v35 }
 0x310   : > { %v1002_v11 = vpop.permute.xlu0 %1001  ;;  %1148 = vmatpush1.bf16.msra.mxu1 %v1119_v43 }
 0x311   : > { %995 = vst [vmem:[#allocation3 + $0xd0] sm:$0xff] %v991_v39  ;;  %v1004_v41 = vpop.permute.xlu1 %1003  ;;  %v1122_v45 = vpack.c.bf16 %v992_v10, %v2451_v27  ;;  %v1121_v48 = vpack.c.bf16 %v991_v39, %v2448_v26 }
 0x312   : > { %v1006_v18 = vsel %vm558_vm6, %v1002_v11, %v1004_v41  ;;  %v1014_v17 = vsel %vm558_vm6, %v1004_v41, %v1002_v11 }
 0x313   : > { %v1029_v40 = vmul.f32 %v2454_v28, %v1006_v18  ;;  %v1030_v42 = vmul.f32 %v2457_v29, %v1014_v17  ;;  %1149 = vmatprep.subr.bf16.mxu1 %v1122_v45  ;;  %v1844_v45 = vld [vmem:[%s2725_s3 + $0x1] ss:$0 sm:$0xff] }
 0x314   : > { %v1040_v19 = vpop.permute.xlu0 %1039  ;;  %1150 = vmatpush1.bf16.msra.mxu1 %v1121_v48 }
 0x315   : > { %1033 = vst [vmem:[#allocation3 + $0xf0] sm:$0xff] %v1029_v40  ;;  %v1042_v20 = vpop.permute.xlu1 %1041  ;;  %v1124_v16 = vpack.c.bf16 %v1030_v42, %v2471_v38  ;;  %v1123_v44 = vpack.c.bf16 %v1029_v40, %v2468_v37  ;;  %v1964_v37 = vld [vmem:[%s2728_s6 + $0x68] sm:$0xff]  }
 0x316   : > { %v1044_v27 = vsel %vm585_vm7, %v1040_v19, %v1042_v20  ;;  %v1052_v26 = vsel %vm585_vm7, %v1042_v20, %v1040_v19  ;;  %v1965_v38 = vld [vmem:[%s2728_s6 + $0x28] sm:$0xff]   ;;  %1867 = vmatprep.subr.bf16.mxu0 %v1964_v37 }
 0x317   : > { %v1067_v46 = vmul.f32 %v1058_v0, %v1044_v27  ;;  %v1068_v51 = vmul.f32 %v1062_v12, %v1052_v26  ;;  %1151 = vmatprep.subr.bf16.mxu1 %v1124_v16  ;;  %1868 = vmatpush3.bf16.msra.mxu0 %v1965_v38 }
 0x318   : > { %1152 = vmatpush1.bf16.msra.mxu1 %v1123_v44  ;;  %1869 = vmatprep.subr.bf16.mxu0 %v1966_v53 }
 0x319   : > { %1071 = vst [vmem:[#allocation3 + $0x110] sm:$0xff] %v1067_v46  ;;  %v1126_v28 = vpack.c.bf16 %v1068_v51, %v1066_v36  ;;  %v1125_v29 = vpack.c.bf16 %v1067_v46, %v1065_v22  ;;  %v1845_v46 = vld [vmem:[%s2725_s3 + $0x2] ss:$0 sm:$0xff] }
 0x31b   : > { %1153 = vmatprep.subr.bf16.mxu1 %v1126_v28  ;;  %1870 = vmatpush3.bf16.msra.mxu0 %v1967_v50 }
 0x31c   : > { %1154 = vmatpush1.bf16.msra.mxu1 %v1125_v29  ;;  %1871 = vmatprep.subr.bf16.mxu0 %v1968_v54 }
 0x31d   : > { %1647 = vmatprep.subr.bf16.mxu1 %v2043_v2 }
 0x31f   : > { %1170 = vmatmul.mubr.bf16.vlgmr.msra.gmra.mrb[0].mxu1 %v1822_v52  ;;  %1872 = vmatpush3.bf16.msra.mxu0 %v1969_v55 }
 0x320   : > { %1881 = vmatprep.subr.bf16.mxu0 %v2046_v60  ;;  %1853 = vmatprep.mubr.msk.bf16.mxu1 %vm422_vm0, %v1852_v6  ;;  %v1848_v6 = vld [vmem:[%s2725_s3 + $0x6] ss:$0 sm:$0xff] }
 0x3f2   : > { %v1171_v7 = vpop.f32.mrb[0].mxu1 }
 0x3f3   : > { %1178 = vst [vmem:[#allocation2 + $0x10] sm:$0xff] %v1171_v7  ;;  %v1173_v56 = vpop.f32.mrb[1].mxu1  ;;  %v1184_v57 = vpack.c.bf16 %v1171_v7, %v2280_v30 }
 0x3f4   : > { %v1175_v58 = vpop.f32.mrb[2].mxu1  ;;  %v1185_v59 = vpack.c.bf16 %v1173_v56, %v2283_v31  ;;  %v1846_v56 = vld [vmem:[%s2725_s3 + $0x3] ss:$0 sm:$0xff] }
 0x3f5   : > { %v1176_v25 = vpop.f32.mrb[3].mxu1 }
 0x3f6   : > { %1346 = vmatprep.mubr.bf16.mxu0 %v1185_v59 }
 0x3f7   : > { %1347 = vmatmul.mubr.bf16.vlgmr.msra.gmra.mrb[8].mxu0 %v1184_v57 }
 0x3f8   : > { %1883 = vmatprep.mubr.msk.bf16.mxu0 %vm2047_vm11, %v2046_v60 }
 0x4ca   : > { %v1873_v61 = vpop.f32.mrb[8].mxu0 }
 0x4cb   : > { %v1874_v63 = vpop.f32.mrb[9].mxu0 }
 0x4cc   : > { %v1875_v62 = vadd.f32 %v1874_v63, %v1873_v61  ;;  %v1876_v4 = vpop.f32.mrb[10].mxu0 }
 0x4cd   : > { %v1877_v8 = vpop.f32.mrb[11].mxu0 }
 0x4ce   : > { %1356 = vst.msk [vmem:[#allocation2] sm:$0xff] %vm1355_vm12, %v1875_v62  ;;  %v1878_v0 = vadd.f32 %v1877_v8, %v1876_v4 }
 0x4d0   : > { %1357 = vst.msk [vmem:[#allocation2 + $0x10] sm:$0xff] %vm1355_vm12, %v1878_v0 }
 0x4d5   : > { %v2573_v30 = vld [vmem:[#allocation2] sm:$0xff] }
 0x4d6   : > { %v1360_v12 = vmax.f32 %v2573_v30, 0.0  ;;  %v1847_v30 = vld [vmem:[%s2725_s3 + $0x5] ss:$0 sm:$0xff] }
 0x4d7   : > { %v2575_v31 = vld [vmem:[#allocation2 + $0x10] sm:$0xff] }
 0x4d8   : > { %v1361_v1 = vmax.f32 %v2575_v31, 0.0  ;;  %v1694_v24 = vsel %vm1355_vm12, %v1360_v12, 0.0 }
 0x4da   : > { %v1362_v13 = vpack.c.bf16 %v1361_v1, %v1360_v12  ;;  %v1697_v32 = vsel %vm1355_vm12, %v1361_v1, 0.0 }
 0x4dc   : > { %1882 = vmatpush3.bf16.msra.mxu0 %v1362_v13 }
 0x4df   : > { %1884 = vmatmul.mubr.msk.bf16.vlgmr.msra.gmra.mrb[12].mxu0 %vm422_vm0, %v1970_v14  ;;  %vm1550_vm0 = vcmask 465920  }
 0x5b2   : > { %v1407_v9 = vpop.f32.mrb[12].mxu0 }
 0x5b3   : > { %v1414_v15 = vmax.f32 %v1407_v9, 0.0  ;;  %v1885_v21 = vpop.f32.mrb[13].mxu0 }
 0x5b4   : > { %v1410_v22 = vpop.f32.mrb[14].mxu0 }
 0x5b5   : > { %1512 = vst.msk [vmem:[#allocation3 + $0x80] sm:$0xff] %vm1355_vm12, %v1414_v15  ;;  %v1415_v36 = vmax.f32 %v1410_v22, 0.0  ;;  %1418 = vrot.lane.b32.xlu0 %v1414_v15, %s2048_s14  ;;  %v1886_v23 = vpop.f32.mrb[15].mxu0 }
 0x5b7   : > { %1513 = vst.msk [vmem:[#allocation3 + $0x90] sm:$0xff] %vm1355_vm12, %v1415_v36  ;;  %1420 = vrot.lane.b32.xlu1 %v1415_v36, %s2048_s14  ;;  %s2057_s14 = smov 57  }
 0x5b9   : > { %1424 = vrot.lane.b32.xlu0 %v1414_v15, %s2049_s29 }
 0x5bb   : > { %1426 = vrot.lane.b32.xlu1 %v1415_v36, %s2049_s29  ;;  %s2058_s29 = smov 120  }
 0x5bd   : > { %1442 = vrot.lane.b32.xlu0 %v1414_v15, %s2050_s22 }
 0x5bf   : > { %1444 = vrot.lane.b32.xlu1 %v1415_v36, %s2050_s22  ;;  %s2059_s22 = smov 56  }
 0x5c1   : > { %1448 = vrot.lane.b32.xlu0 %v1414_v15, %s2051_s15 }
 0x5c3   : > { %1450 = vrot.lane.b32.xlu1 %v1415_v36, %s2051_s15  ;;  %s2061_s15 = smov 55  }
 0x5c5   : > { %1465 = vrot.lane.b32.xlu0 %v1414_v15, %s2052_s0 }
 0x5c7   : > { %1467 = vrot.lane.b32.xlu1 %v1415_v36, %s2052_s0 }
 0x5c9   : > { %1471 = vrot.lane.b32.xlu0 %v1414_v15, %s2053_s25 }
 0x5cb   : > { %1473 = vrot.lane.b32.xlu1 %v1415_v36, %s2053_s25 }
 0x5cd   : > { %1489 = vrot.lane.b32.xlu0 %v1414_v15, %s2054_s12 }
 0x5cf   : > { %1491 = vrot.lane.b32.xlu1 %v1415_v36, %s2054_s12  ;;  %s378_s12 = sand.u32 1, %s2027_s18  }
 0x5d0   : > { %s1730_s0 = scalar_lea.sflag [#allocation5], %s378_s12 }
 0x5d1   : > { %1495 = vrot.lane.b32.xlu0 %v1414_v15, %s2745_s24 }
 0x5d3   : > { %1497 = vrot.lane.b32.xlu1 %v1415_v36, %s2745_s24  ;;  %s2060_s24 = smov 119  }
 0x5d5   : > { %1514 = vrot.lane.b32.xlu0 %v1414_v15, %s2746_s16 }
 0x5d7   : > { %1516 = vrot.lane.b32.xlu1 %v1415_v36, %s2746_s16 }
 0x5d9   : > { %1520 = vrot.lane.b32.xlu0 %v1414_v15, %s2055_s30 }
 0x5db   : > { %1522 = vrot.lane.b32.xlu1 %v1415_v36, %s2055_s30 }
 0x5dd   : > { %1538 = vrot.lane.b32.xlu0 %v1414_v15, %s2056_s13 }
 0x5df   : > { %1540 = vrot.lane.b32.xlu1 %v1415_v36, %s2056_s13  ;;  %s1854_s13 = sshll.u32 %s2144_s21, 4  ;;  %s2062_s21 = smov [#allocation4]  }
 0x5e0   : > { %s1977_s16 = sshll.u32 %s2062_s21, 4  ;;  %s1978_s16 = int_to_ptr.vmem [resolvable:$false] %s1977_s16 }
 0x5e1   : > { %1544 = vrot.lane.b32.xlu0 %v1414_v15, %s2057_s14  ;;  %s1979_s30 = scalar_lea.vmem %s1978_s16, 32 }
 0x5e3   : > { %1546 = vrot.lane.b32.xlu1 %v1415_v36, %s2057_s14  ;;  %s379_s14 = scalar_lea.vmem [#allocation4], %s378_s12 }
 0x5e5   : > { %1562 = vrot.lane.b32.xlu0 %v1414_v15, %s2058_s29 }
 0x5e7   : > { %1564 = vrot.lane.b32.xlu1 %v1415_v36, %s2058_s29  ;;  %s1742_s29 = sshll.u32 %s379_s14, 4  ;;  %s2682_s29 = int_to_ptr.vmem [resolvable:$true] %s1742_s29 }
 0x5e8   : > { %s1973_s25 = scalar_lea.vmem %s2682_s29, 16  ;;  %p1980_p0 = scmp.lt.s32.totalorder %s2682_s29, %s1978_s16 }
 0x5e9   : > { %1568 = vrot.lane.b32.xlu0 %v1414_v15, %s2059_s22  ;;  %p1974_p11 = scmp.ne.s32.totalorder %s2682_s29, %s1973_s25  ;;  %p1981_p1 = scmp.lt.s32.totalorder %s1979_s30, %s1973_s25 }
 0x5eb   : > { %1570 = vrot.lane.b32.xlu1 %v1415_v36, %s2059_s22  ;;  %p1975_p12 = pnand %p1974_p11, %p2161_p5  ;;  %p1982_p2 = por %p1981_p1, %p1980_p0 }
 0x5ed   : > { %1586 = vrot.lane.b32.xlu0 %v1414_v15, %s2060_s24  ;;  %p1976_p13 = pneg %p1975_p12 }
 0x5ef   : > { %1588 = vrot.lane.b32.xlu1 %v1415_v36, %s2060_s24  ;;  %p1983_p3 = pnand %p1982_p2, %p1976_p13 }
 0x5f1   : > { %1592 = vrot.lane.b32.xlu0 %v1414_v15, %s2061_s15 }
 0x5f3   : > { %1594 = vrot.lane.b32.xlu1 %v1415_v36, %s2061_s15  ;;  %s2680_s15 = scalar_lea.hbm %s2733_s11, %s1854_s13 }
 0x610   : > { %1695 = vadd.xlane.f32.xlu0 %v1694_v24  ;;  %v1619_v24 = vld [vmem:[#allocation3 + $0x90] sm:$0xff] }
 0x617   : > { %1698 = vadd.xlane.f32.xlu1 %v1697_v32 }
 0x627   : > { %v1419_v33 = vpop.permute.xlu0 %1418 }
 0x629   : > { %v1421_v3 = vpop.permute.xlu1 %1420 }
 0x62b   : > { %v1425_v35 = vpop.permute.xlu0 %1424 }
 0x62c   : > { %v1431_v43 = vsel %vm1430_vm13, %v1419_v33, %v1425_v35 }
 0x62d   : > { %v1438_v47 = vmul.f32 %v1843_v34, %v1431_v43  ;;  %v1427_v49 = vpop.permute.xlu1 %1426 }
 0x62e   : > { %v1432_v39 = vsel %vm1430_vm13, %v1421_v3, %v1427_v49  ;;  %v1618_v3 = vld [vmem:[#allocation3 + $0x80] sm:$0xff] }
 0x62f   : > { %1440 = vst.msk [vmem:[#allocation3] sm:$0xff] %vm1355_vm12, %v1438_v47  ;;  %v1439_v10 = vmul.f32 %v1843_v34, %v1432_v39  ;;  %v1443_v11 = vpop.permute.xlu0 %1442  ;;  %v1632_v43 = vpack.c.bf16 %v1619_v24, %v1618_v3 }
 0x631   : > { %1441 = vst.msk [vmem:[#allocation3 + $0x10] sm:$0xff] %vm1355_vm12, %v1439_v10  ;;  %v1445_v41 = vpop.permute.xlu1 %1444 }
 0x633   : > { %v1449_v48 = vpop.permute.xlu0 %1448 }
 0x634   : > { %v1454_v18 = vsel %vm704_vm10, %v1443_v11, %v1449_v48  ;;  %v1849_v48 = vld [vmem:[%s2725_s3 + $0x7] ss:$0 sm:$0xff] }
 0x635   : > { %v1461_v17 = vmul.f32 %v1844_v45, %v1454_v18  ;;  %v1451_v40 = vpop.permute.xlu1 %1450 }
 0x636   : > { %v1455_v42 = vsel %vm704_vm10, %v1445_v41, %v1451_v40  ;;  %v1610_v16 = vld [vmem:[#allocation3] sm:$0xff] }
 0x637   : > { %1463 = vst.msk [vmem:[#allocation3 + $0x20] sm:$0xff] %vm1355_vm12, %v1461_v17  ;;  %v1462_v19 = vmul.f32 %v1844_v45, %v1455_v42  ;;  %v1466_v20 = vpop.permute.xlu0 %1465 }
 0x638   : > { %v1611_v44 = vld [vmem:[#allocation3 + $0x10] sm:$0xff] }
 0x639   : > { %1464 = vst.msk [vmem:[#allocation3 + $0x30] sm:$0xff] %vm1355_vm12, %v1462_v19  ;;  %v1468_v27 = vpop.permute.xlu1 %1467  ;;  %v1628_v26 = vpack.c.bf16 %v1611_v44, %v1610_v16 }
 0x63b   : > { %v1472_v51 = vpop.permute.xlu0 %1471  ;;  %1648 = vmatpush1.bf16.msra.mxu1 %v1628_v26 }
 0x63c   : > { %v1478_v28 = vsel %vm1477_vm14, %v1466_v20, %v1472_v51  ;;  %1649 = vmatprep.subr.bf16.mxu1 %v2043_v2  ;;  %v1850_v51 = vld [vmem:[%s2725_s3 + $0x8] ss:$0 sm:$0xff] }
 0x63d   : > { %v1485_v29 = vmul.f32 %v1845_v46, %v1478_v28  ;;  %v1474_v52 = vpop.permute.xlu1 %1473 }
 0x63e   : > { %v1479_v37 = vsel %vm1477_vm14, %v1468_v27, %v1474_v52  ;;  %v1612_v50 = vld [vmem:[#allocation3 + $0x20] sm:$0xff] }
 0x63f   : > { %1487 = vst.msk [vmem:[#allocation3 + $0x40] sm:$0xff] %vm1355_vm12, %v1485_v29  ;;  %v1486_v38 = vmul.f32 %v1845_v46, %v1479_v37  ;;  %v1490_v53 = vpop.permute.xlu0 %1489 }
 0x640   : > { %v1613_v54 = vld [vmem:[#allocation3 + $0x30] sm:$0xff] }
 0x641   : > { %1488 = vst.msk [vmem:[#allocation3 + $0x50] sm:$0xff] %vm1355_vm12, %v1486_v38  ;;  %v1492_v55 = vpop.permute.xlu1 %1491  ;;  %v1629_v7 = vpack.c.bf16 %v1613_v54, %v1612_v50 }
 0x643   : > { %v1496_v57 = vpop.permute.xlu0 %1495  ;;  %1650 = vmatpush1.bf16.msra.mxu1 %v1629_v7 }
 0x644   : > { %v1501_v58 = vsel %vm476_vm3, %v1490_v53, %v1496_v57  ;;  %1651 = vmatprep.subr.bf16.mxu1 %v2043_v2 }
 0x645   : > { %v1508_v59 = vmul.f32 %v1846_v56, %v1501_v58  ;;  %v1498_v25 = vpop.permute.xlu1 %1497  ;;  %v1851_v58 = vcombine.low %v2596_v5, %v2596_v5  ;;  %v1708_v5 = vld [vmem:[%s2731_s9 + $0x8] sm:$0xff] }
 0x646   : > { %v1502_v60 = vsel %vm476_vm3, %v1492_v55, %v1498_v25  ;;  %v1614_v62 = vld [vmem:[#allocation3 + $0x40] sm:$0xff]  ;;  %vm1713_vm3 = vcmask 80896  }
 0x647   : > { %1510 = vst.msk [vmem:[#allocation3 + $0x60] sm:$0xff] %vm1355_vm12, %v1508_v59  ;;  %v1509_v61 = vmul.f32 %v1846_v56, %v1502_v60  ;;  %v1515_v63 = vpop.permute.xlu0 %1514 }
 0x648   : > { %v1615_v4 = vld [vmem:[#allocation3 + $0x50] sm:$0xff] }
 0x649   : > { %1511 = vst.msk [vmem:[#allocation3 + $0x70] sm:$0xff] %vm1355_vm12, %v1509_v61  ;;  %v1517_v8 = vpop.permute.xlu1 %1516  ;;  %v1630_v0 = vpack.c.bf16 %v1615_v4, %v1614_v62 }
 0x64b   : > { %v1521_v31 = vpop.permute.xlu0 %1520  ;;  %1652 = vmatpush1.bf16.msra.mxu1 %v1630_v0 }
 0x64c   : > { %v1527_v12 = vsel %vm1526_vm15, %v1515_v63, %v1521_v31  ;;  %1653 = vmatprep.subr.bf16.mxu1 %v2043_v2  ;;  %v1707_v31 = vld [vmem:[%s2731_s9] sm:$0xff] }
 0x64d   : > { %v1534_v1 = vmul.f32 %v1847_v30, %v1527_v12  ;;  %v1523_v13 = vpop.permute.xlu1 %1522 }
 0x64e   : > { %v1528_v14 = vsel %vm1526_vm15, %v1517_v8, %v1523_v13  ;;  %v1616_v21 = vld [vmem:[#allocation3 + $0x60] sm:$0xff] }
 0x64f   : > { %1536 = vst.msk [vmem:[#allocation3 + $0xa0] sm:$0xff] %vm1355_vm12, %v1534_v1  ;;  %v1535_v9 = vmul.f32 %v1847_v30, %v1528_v14  ;;  %v1539_v15 = vpop.permute.xlu0 %1538  ;;  %v1709_v13 = vld [vmem:[%s2731_s9 + $0x10] sm:$0xff] }
 0x650   : > { %v1617_v22 = vld [vmem:[#allocation3 + $0x70] sm:$0xff] }
 0x651   : > { %1537 = vst.msk [vmem:[#allocation3 + $0xb0] sm:$0xff] %vm1355_vm12, %v1535_v9  ;;  %v1541_v36 = vpop.permute.xlu1 %1540  ;;  %v1631_v23 = vpack.c.bf16 %v1617_v22, %v1616_v21 }
 0x653   : > { %v1545_v32 = vpop.permute.xlu0 %1544  ;;  %1654 = vmatpush1.bf16.msra.mxu1 %v1631_v23 }
 0x654   : > { %v1551_v33 = vsel %vm1550_vm0, %v1539_v15, %v1545_v32  ;;  %1655 = vmatprep.subr.bf16.mxu1 %v2043_v2 }
 0x655   : > { %v1558_v34 = vmul.f32 %v1848_v6, %v1551_v33  ;;  %v1547_v35 = vpop.permute.xlu1 %1546 }
 0x656   : > { %v1552_v47 = vsel %vm1550_vm0, %v1541_v36, %v1547_v35  ;;  %v1620_v10 = vld [vmem:[#allocation3 + $0xa0] sm:$0xff]  ;;  %v1725_v35 = vld [vmem:[%s2732_s10] sm:$0x1] }
 0x657   : > { %1560 = vst.msk [vmem:[#allocation3 + $0xc0] sm:$0xff] %vm1355_vm12, %v1558_v34  ;;  %v1559_v49 = vmul.f32 %v1848_v6, %v1552_v47  ;;  %v1563_v39 = vpop.permute.xlu0 %1562  ;;  %1656 = vmatpush1.bf16.msra.mxu1 %v1632_v43 }
 0x658   : > { %1657 = vmatprep.subr.bf16.mxu1 %v2043_v2  ;;  %v1621_v11 = vld [vmem:[#allocation3 + $0xb0] sm:$0xff] }
 0x659   : > { %1561 = vst.msk [vmem:[#allocation3 + $0xd0] sm:$0xff] %vm1355_vm12, %v1559_v49  ;;  %v1565_v41 = vpop.permute.xlu1 %1564  ;;  %v1633_v45 = vpack.c.bf16 %v1621_v11, %v1620_v10 }
 0x65b   : > { %v1569_v18 = vpop.permute.xlu0 %1568  ;;  %1658 = vmatpush1.bf16.msra.mxu1 %v1633_v45 }
 0x65c   : > { %v1575_v17 = vsel %vm1574_vm1, %v1563_v39, %v1569_v18  ;;  %1659 = vmatprep.subr.bf16.mxu1 %v2043_v2 }
 0x65d   : > { %v1582_v40 = vmul.f32 %v1849_v48, %v1575_v17  ;;  %v1571_v42 = vpop.permute.xlu1 %1570 }
 0x65e   : > { %v1576_v19 = vsel %vm1574_vm1, %v1565_v41, %v1571_v42  ;;  %v1622_v44 = vld [vmem:[#allocation3 + $0xc0] sm:$0xff] }
 0x65f   : > { %1584 = vst.msk [vmem:[#allocation3 + $0xe0] sm:$0xff] %vm1355_vm12, %v1582_v40  ;;  %v1583_v20 = vmul.f32 %v1849_v48, %v1576_v19  ;;  %v1587_v16 = vpop.permute.xlu0 %1586 }
 0x660   : > { %v1623_v27 = vld [vmem:[#allocation3 + $0xd0] sm:$0xff] }
 0x661   : > { %1585 = vst.msk [vmem:[#allocation3 + $0xf0] sm:$0xff] %vm1355_vm12, %v1583_v20  ;;  %v1589_v26 = vpop.permute.xlu1 %1588  ;;  %v1634_v46 = vpack.c.bf16 %v1623_v27, %v1622_v44 }
 0x663   : > { %v1593_v28 = vpop.permute.xlu0 %1592  ;;  %1660 = vmatpush1.bf16.msra.mxu1 %v1634_v46 }
 0x664   : > { %v1599_v29 = vsel %vm1598_vm2, %v1587_v16, %v1593_v28  ;;  %1661 = vmatprep.subr.bf16.mxu1 %v2043_v2 }
 0x665   : > { %v1606_v52 = vmul.f32 %v1850_v51, %v1599_v29  ;;  %v1595_v37 = vpop.permute.xlu1 %1594 }
 0x666   : > { %v1600_v38 = vsel %vm1598_vm2, %v1589_v26, %v1595_v37  ;;  %v1624_v50 = vld [vmem:[#allocation3 + $0xe0] sm:$0xff] }
 0x667   : > { %1608 = vst.msk [vmem:[#allocation3 + $0x100] sm:$0xff] %vm1355_vm12, %v1606_v52  ;;  %v1607_v53 = vmul.f32 %v1850_v51, %v1600_v38 }
 0x668   : > { %v1625_v54 = vld [vmem:[#allocation3 + $0xf0] sm:$0xff] }
 0x669   : > { %1609 = vst.msk [vmem:[#allocation3 + $0x110] sm:$0xff] %vm1355_vm12, %v1607_v53  ;;  %v1635_v55 = vpack.c.bf16 %v1625_v54, %v1624_v50 }
 0x66b   : > { %1662 = vmatpush1.bf16.msra.mxu1 %v1635_v55 }
 0x66c   : > { %1663 = vmatprep.subr.bf16.mxu1 %v2043_v2 }
 0x66e   : > { %v1626_v7 = vld [vmem:[#allocation3 + $0x100] sm:$0xff] }
 0x670   : > { %v1627_v56 = vld [vmem:[#allocation3 + $0x110] sm:$0xff] }
 0x671   : > { %v1636_v57 = vpack.c.bf16 %v1627_v56, %v1626_v7 }
 0x673   : > { %1664 = vmatpush1.bf16.msra.mxu1 %v1636_v57 }
 0x676   : > { %1680 = vmatmul.mubr.bf16.vlgmr.msra.gmra.mrb[4].mxu1 %v1851_v58 }
 0x69d   : > { %v1696_v8 = vpop.xlane.xlu0 %1695 }
 0x69e   : > { %v1704_v30 = vmul.f32 0.015625, %v1696_v8 }
 0x6a0   : > { %v1710_v1 = vmul.f32 %v1707_v31, %v1704_v30 }
 0x6a2   : > { %v1714_v21 = vsel %vm1713_vm3, %v1710_v1, 0.0 }
 0x6a4   : > { %v1699_v2 = vpop.xlane.xlu1 %1698 }
 0x6a5   : > { %v1705_v0 = vmul.f32 0.015625, %v1699_v2 }
 0x6a7   : > { %v1711_v12 = vmul.f32 %v1708_v5, %v1705_v0 }
 0x6a9   : > { %v1715_v9 = vsel %vm1713_vm3, %v1711_v12, 0.0 }
 0x6aa   : > { %v1716_v36 = vadd.f32 %v1715_v9, %v1714_v21 }
 0x749   : > { %v1681_v59 = vpop.f32.mrb[4].mxu1 }
 0x74a   : > { %1687 = vst.msk [vmem:[#allocation2 + $0x20] sm:$0xff] %vm1355_vm12, %v1681_v59  ;;  %v1683_v25 = vpop.f32.mrb[5].mxu1 }
 0x74b   : > { %v1684_v60 = vpop.f32.mrb[6].mxu1 }
 0x74c   : > { %v1685_v61 = vpop.f32.mrb[7].mxu1 }
 0x751   : > { %v1690_v63 = vld [vmem:[#allocation2 + $0x20] sm:$0xff] }
 0x752   : > { %v1693_v62 = vmax.f32 %v1690_v63, 0.0 }
 0x754   : > { %v1700_v4 = vsel %vm1355_vm12, %v1693_v62, 0.0 }
 0x755   : > { %1701 = vadd.xlane.f32.xlu0 %v1700_v4 }
 0x7e2   : > { %v1702_v14 = vpop.xlane.xlu0 %1701 }
 0x7e3   : > { %v1706_v15 = vmul.f32 0.015625, %v1702_v14 }
 0x7e5   : > { %v1712_v22 = vmul.f32 %v1709_v13, %v1706_v15 }
 0x7e7   : > { %v1717_v23 = vsel %vm1713_vm3, %v1712_v22, 0.0 }
 0x7e8   : > { %v1718_v6 = vadd.f32 %v1717_v23, %v1716_v36 }
 0x7ea   : > { %v1719_v24 = vrot.slane %v1718_v6, 4 }
 0x7ec   : > { %v1720_v32 = vadd.f32 %v1719_v24, %v1718_v6 }
 0x7ee   : > { %v1721_v33 = vrot.slane %v1720_v32, 2 }
 0x7f0   : > { %v1722_v3 = vadd.f32 %v1721_v33, %v1720_v32 }
 0x7f2   : > { %v1723_v34 = vrot.slane %v1722_v3, 1 }
 0x7f4   : > { %v1724_v43 = vadd.f32 %v1723_v34, %v1722_v3 }
 0x7f6   : > { %v1726_v47 = vadd.f32 %v1725_v35, %v1724_v43 }
 0x7f8   : > { %1728 = vst.msk [vmem:[%s379_s14] sm:$0x1] %vm1727_vm4, %v1726_v47 }
 0x7f9   : > { %1986 = shalt.err (!%p1983_p3)
}
 0x7fa   : > { %s1987_s12 = scalar_lea.hbm %s2680_s15, 16  ;;  %s1991_s22 = scalar_lea.hbm %s2733_s11, 32 }
 0x7fb   : > { %p1988_p4 = scmp.ne.s32.totalorder %s2680_s15, %s1987_s12  ;;  %p1992_p9 = scmp.lt.u32.totalorder %s2680_s15, %s2733_s11 }
 0x7fc   : > { %p1993_p10 = scmp.lt.u32.totalorder %s1991_s22, %s1987_s12  ;;  %p1995_p12 = scmp.lt.u32.totalorder %s1987_s12, %s2680_s15 }
 0x7fd   : > { %p1989_p7 = pnand %p1988_p4, %p2161_p5 }
 0x7fe   : > { %p1994_p11 = por %p1993_p10, %p1992_p9 }
 0x7ff   : > { %p1990_p8 = pneg %p1989_p7 }
 0x800   : > { %p1996_p13 = por %p1995_p12, %p1994_p11 }
 0x802   : > { %p1997_p0 = pnand %p1996_p13, %p1990_p8 }
 0x804   : > { %2000 = shalt.err (!%p1997_p0)
}
 0x805   : > { %1887 = dma.vmem_to_hbm [thread:$0]  (%p2161_p5), %s2682_s29, 16, %s2680_s15, %s1730_s0  }
 0x806 PF: > { %p1893_p1 = scmp.ge.s32.totalorder %s2035_s20, 2  ;;  %s1754_s25 = sand.u32 1, %s2023_s17  }
 0x807   : > { %s1755_s16 = scalar_lea.sflag [#allocation5], %s1754_s25 }
 0x808   : > { %p1890_p2 = pnand %p1893_p1, %p2165_p6 }
 0x80a   : > { %2018 = dma.done.wait (!%p1890_p2), %s1755_s16, 16  }
 0x80b   : > { %2020 = vsyncadd (!%p1890_p2), %s1755_s16, 4294967280  ;;  %p21_p3 = scmp.ge.s32.totalorder %s2148_s23, 4   ;;  %s2747_s17 = smov %s2027_s18 }
 0x80c   : > { %s2748_s18 = smov %s2031_s19  ;;  %s2749_s19 = smov %s2159_s26 }
 0x80d   : > { %s2750_s20 = smov %s2148_s23  ;;  %23 = sbr.rel (!%p21_p3) target bundleno = 5 (0x5), region = 106 }
 0x814   :  { %1759 = vsyncpa [#allocation5], 1 }
 0x815   :  { %1761 = vsyncpa [#allocation5 + $0x1], 1 }

</bundles_post_ra>
